<compile_context>
chip_gen: v5e
topology: v5e:2x2
jax: 0.10.0
libtpu: 0.0.40
codegen_flags: <defaults>
</compile_context>

<pallas_src>
import jax
import jax.numpy as jnp
from jax.experimental import pallas as pl
from jax.experimental.pallas import tpu as pltpu

# ---- static model config (small shapes consistent with the module) ----------
B = 8              # batch
N_SPARSE = 4       # sparse feature fields
N_DENSE = 2        # dense feature fields
N_FEAT = N_SPARSE + N_DENSE
EMB = 8            # emb_size
N_HEADS = 2        # att_head_num
HEAD_D = EMB // N_HEADS
N_ATT_LAYERS = 3   # att_layer_num
H1, H2 = 32, 16    # hidden_dims (scaled-down [256, 128])
VOCABS = [11, 23, 7, 17]

BS = B * N_SPARSE                   # batch*fields (lane axis of attention)
DNN_IN = N_SPARSE * EMB + N_DENSE   # 34
assert N_SPARSE & (N_SPARSE - 1) == 0, "field count must be a power of two"
LOG2_S = N_SPARSE.bit_length() - 1  # used for shift instead of integer div

# packed-weight row offsets (all multiples of 8 -> aligned sublane slices)
ROW_ATT = 0                                  # 3 layers x (4E, E) fused proj
ROW_W1 = ROW_ATT + 4 * EMB * N_ATT_LAYERS    # 96  : (H1, DNN_IN+1)  [W1 | b1]
ROW_W2 = ROW_W1 + H1                         # 128 : (H2, H1)
ROW_WA = ROW_W2 + H2                         # 144 : (E, B*S) att-output weights
ROW_VEC = ROW_WA + EMB                       # 152 : [w_out_dnn(0:16) | wide_w(16:22) | wide_b(22)]
ROW_B2 = 160                                 # (H2, 1)
WP_ROWS, WP_COLS = 176, DNN_IN + 1           # (176, 35)

# packed-activation row offsets
ACT_ATT = 0                                  # (E, B*S)      attention input, transposed
ACT_X = 8                                    # (N_FEAT+1, B) [X^T ; 1]  for the wide part
ACT_DNN = 16                                 # (DNN_IN+1, B) [dnn_input^T ; 1]
ACT_ROWS, ACT_COLS = 56, BS


def autoint_kernel(acts_ref, w_ref, out_ref):
    f32 = jnp.float32

    # ---- unpack the two packed operands (static, aligned slices) ----
    att = acts_ref[ACT_ATT:ACT_ATT + EMB, :]                      # (E, B*S)
    x_aug = acts_ref[ACT_X:ACT_X + N_FEAT + 1, 0:B]               # (7, B)
    dnn_aug = acts_ref[ACT_DNN:ACT_DNN + DNN_IN + 1, 0:B]         # (35, B)

    w1 = w_ref[ROW_W1:ROW_W1 + H1, 0:DNN_IN + 1]                  # (32, 35) [W1 | b1]
    w2 = w_ref[ROW_W2:ROW_W2 + H2, 0:H1]                          # (16, 32)
    w_att_out = w_ref[ROW_WA:ROW_WA + EMB, 0:BS]                  # (8, 32)
    w_out_dnn = w_ref[ROW_VEC:ROW_VEC + 1, 0:H2]                  # (1, 16)
    w_wide = w_ref[ROW_VEC:ROW_VEC + 1, H2:H2 + N_FEAT + 1]       # (1, 7) [wide_w | wide_b]
    b2 = w_ref[ROW_B2:ROW_B2 + H2, 0:1]                           # (16, 1)

    # ---- wide part: Linear(N_FEAT, 1) -> ReLU (dropout = identity, eval) ----
    wide = jnp.maximum(jnp.dot(w_wide, x_aug, preferred_element_type=f32), 0.0)   # (1, B)

    # ---- DNN on [flatten(sparse), dense] (dropout = identity, eval) ----
    h1 = jnp.maximum(jnp.dot(w1, dnn_aug, preferred_element_type=f32), 0.0)       # (H1, B)
    h2 = jnp.maximum(jnp.dot(w2, h1, preferred_element_type=f32) + b2, 0.0)       # (H2, B)
    logit = jnp.dot(w_out_dnn, h2, preferred_element_type=f32)                    # (1, B)

    # ---- block-diagonal "same example" mask (batch is folded onto lanes) ----
    jj = jax.lax.broadcasted_iota(jnp.int32, (BS, BS), 0)   # key index   (sublane)
    ii = jax.lax.broadcasted_iota(jnp.int32, (BS, BS), 1)   # query index (lane)
    neg_bias = jnp.where((jj >> LOG2_S) == (ii >> LOG2_S), 0.0, -1e30)            # (BS, BS)

    # ---- stacked InteractLayers; fused [W_Q; W_K; W_V; W_Res^T] projection ----
    for layer in range(N_ATT_LAYERS):
        r0 = ROW_ATT + 4 * EMB * layer
        fw = w_ref[r0:r0 + 4 * EMB, 0:EMB]                                         # (4E, E)
        proj = jnp.dot(fw, att, preferred_element_type=f32)                        # (4E, B*S)
        q = proj[0:EMB, :]                    # (E, B*S)  == (X @ W_Q^T)^T
        k = proj[EMB:2 * EMB, :]
        v = proj[2 * EMB:3 * EMB, :]
        res = proj[3 * EMB:4 * EMB, :]        # == (X @ W_Res)^T
        kt = jnp.transpose(k)                                                      # (B*S, E)
        heads = []
        for h in range(N_HEADS):
            lo, hi = h * HEAD_D, (h + 1) * HEAD_D
            # scores with keys on sublanes, queries on lanes; scaling=False
            s = jnp.dot(kt[:, lo:hi], q[lo:hi, :], preferred_element_type=f32)     # (BS, BS)
            s = s + neg_bias
            s = s - jnp.max(s, axis=0, keepdims=True)
            p = jnp.exp(s)
            p = p * pl.reciprocal(jnp.sum(p, axis=0, keepdims=True), approx=True)
            heads.append(jnp.dot(v[lo:hi, :], p, preferred_element_type=f32))      # (D, B*S)
        att = jnp.maximum(jnp.concatenate(heads, axis=0) + res, 0.0)               # (E, B*S)

    # ---- dnn_out_layer att-part: <flatten(att_out), w_att> summed per example --
    per_field = jnp.sum(att * w_att_out, axis=0, keepdims=True)                    # (1, B*S)
    gj = jax.lax.broadcasted_iota(jnp.int32, (BS, B), 0)
    gb = jax.lax.broadcasted_iota(jnp.int32, (BS, B), 1)
    grp = ((gj >> LOG2_S) == gb).astype(f32)                                       # (B*S, B)
    logit = logit + jnp.dot(per_field, grp, preferred_element_type=f32)            # (1, B)

    z = wide + logit
    out_ref[...] = 1.0 / (1.0 + jnp.exp(-z))                                       # sigmoid, lane-dense


def _pack_acts(x, sparse, dense):
    ones_row = jnp.ones((1, B), jnp.float32)
    att0_t = sparse.transpose(2, 0, 1).reshape(EMB, BS)                 # (E, B*S)
    x_aug_t = jnp.concatenate([x.T, ones_row], axis=0)                  # (N_FEAT+1, B)
    dnn_aug_t = jnp.concatenate([sparse.reshape(B, -1).T, dense.T, ones_row], axis=0)
    acts = jnp.zeros((ACT_ROWS, ACT_COLS), jnp.float32)
    acts = acts.at[ACT_ATT:ACT_ATT + EMB, :].set(att0_t)
    acts = acts.at[ACT_X:ACT_X + N_FEAT + 1, 0:B].set(x_aug_t)
    acts = acts.at[ACT_DNN:ACT_DNN + DNN_IN + 1, 0:B].set(dnn_aug_t)
    return acts


def _pack_weights(params):
    wp = jnp.zeros((WP_ROWS, WP_COLS), jnp.float32)
    attw = params['att_w']
    for layer in range(N_ATT_LAYERS):
        wq, wk, wv, wr = (attw[4 * layer + j] for j in range(4))
        fw = jnp.concatenate([wq, wk, wv, wr.T], axis=0)                # (4E, E)
        r0 = ROW_ATT + 4 * EMB * layer
        wp = wp.at[r0:r0 + 4 * EMB, 0:EMB].set(fw)
    w1aug = jnp.concatenate([params['dnn_w1'], params['dnn_b1'][:, None]], axis=1)
    wp = wp.at[ROW_W1:ROW_W1 + H1, 0:DNN_IN + 1].set(w1aug)
    wp = wp.at[ROW_W2:ROW_W2 + H2, 0:H1].set(params['dnn_w2'])
    w_a = params['out_w'][0, H2:].reshape(N_SPARSE, EMB)                # (S, E)
    wp = wp.at[ROW_WA:ROW_WA + EMB, 0:BS].set(jnp.tile(w_a.T, (1, B)))  # (E, B*S)
    wp = wp.at[ROW_VEC, 0:H2].set(params['out_w'][0, :H2])
    wp = wp.at[ROW_VEC, H2:H2 + N_FEAT].set(params['wide_w'][0])
    wp = wp.at[ROW_VEC, H2 + N_FEAT].set(params['wide_b'][0])
    wp = wp.at[ROW_B2:ROW_B2 + H2, 0:1].set(params['dnn_b2'][:, None])
    return wp


def autoint_forward(x, emb_tables, params):
    # embedding gather (host-side glue; sparse columns of X hold integer ids)
    sparse = jnp.stack(
        [emb_tables[i][x[:, i].astype(jnp.int32)] for i in range(N_SPARSE)], axis=1)
    dense = x[:, N_SPARSE:]

    acts = _pack_acts(x, sparse, dense)
    wp = _pack_weights(params)

    # NOTE: at realistic batch sizes, replace grid=(1,) with a grid over lane
    # tiles of the batch (activations indexed per tile, weights with constant
    # index maps so they stay resident), and mark the batch axis "parallel"
    # so v7x's two TensorCores split it.  At B=8 a single step is optimal.
    out = pl.pallas_call(
        autoint_kernel,
        out_shape=jax.ShapeDtypeStruct((1, B), jnp.float32),
        grid=(1,),
        in_specs=[pl.BlockSpec((ACT_ROWS, ACT_COLS), lambda i: (0, 0)),
                  pl.BlockSpec((WP_ROWS, WP_COLS), lambda i: (0, 0))],
        out_specs=pl.BlockSpec((1, B), lambda i: (0, 0)),
        compiler_params=pltpu.CompilerParams(dimension_semantics=("arbitrary",)),
    )(acts, wp)
    return out[0]          # (B,)  -- torch: logit.squeeze(1)


# ---- deterministic parameter init (matching the module's __init__ shapes) ----
def init_params(key):
    ks = jax.random.split(key, 12)
    init_std = 1e-4
    emb_tables = [init_std * jax.random.normal(ks[i], (VOCABS[i], EMB), jnp.float32)
                  for i in range(N_SPARSE)]
    params = dict(
        wide_w=1e-5 * jax.random.normal(ks[4], (1, N_FEAT), jnp.float32),
        wide_b=0.01 * jax.random.normal(ks[5], (1,), jnp.float32),
        # per layer: [W_Q, W_K, W_V, W_Res], each (E, E), std 0.05
        att_w=0.05 * jax.random.normal(ks[6], (N_ATT_LAYERS * 4, EMB, EMB), jnp.float32),
        dnn_w1=init_std * jax.random.normal(ks[7], (H1, DNN_IN), jnp.float32),
        dnn_b1=0.01 * jax.random.normal(ks[8], (H1,), jnp.float32),
        dnn_w2=init_std * jax.random.normal(ks[9], (H2, H1), jnp.float32),
        dnn_b2=0.01 * jax.random.normal(ks[10], (H2,), jnp.float32),
        out_w=0.05 * jax.random.normal(ks[11], (1, H2 + N_SPARSE * EMB), jnp.float32),
    )
    return emb_tables, params


# ---- pure-JAX reference mirroring the torch forward (for correctness check) --
def reference_forward(x, emb_tables, params):
    sparse = jnp.stack(
        [emb_tables[i][x[:, i].astype(jnp.int32)] for i in range(N_SPARSE)], axis=1)
    dense = x[:, N_SPARSE:]
    wide = jax.nn.relu(x @ params['wide_w'].T + params['wide_b'])
    att = sparse
    for layer in range(N_ATT_LAYERS):
        WQ, WK, WV, WR = (params['att_w'][4 * layer + j] for j in range(4))
        Q = (att @ WQ.T).reshape(B, N_SPARSE, N_HEADS, HEAD_D).transpose(0, 2, 1, 3)
        K = (att @ WK.T).reshape(B, N_SPARSE, N_HEADS, HEAD_D).transpose(0, 2, 1, 3)
        V = (att @ WV.T).reshape(B, N_SPARSE, N_HEADS, HEAD_D).transpose(0, 2, 1, 3)
        s = Q @ jnp.swapaxes(K, -1, -2)
        p = jax.nn.softmax(s, axis=-1)
        o = (p @ V).transpose(0, 2, 1, 3).reshape(B, N_SPARSE, EMB)
        att = jax.nn.relu(o + att @ WR)
    dnn_in = jnp.concatenate([sparse.reshape(B, -1), dense], axis=1)
    h1 = jax.nn.relu(dnn_in @ params['dnn_w1'].T + params['dnn_b1'])
    h2 = jax.nn.relu(h1 @ params['dnn_w2'].T + params['dnn_b2'])
    stack = jnp.concatenate([h2, att.reshape(B, -1)], axis=1)
    logit = stack @ params['out_w'].T
    return jax.nn.sigmoid(wide + logit)[:, 0]


if __name__ == "__main__":
    key = jax.random.PRNGKey(0)
    k_ids, k_dense, k_params = jax.random.split(key, 3)
    ids = jnp.stack(
        [jax.random.randint(jax.random.fold_in(k_ids, i), (B,), 0, VOCABS[i])
         for i in range(N_SPARSE)], axis=1).astype(jnp.float32)
    dense_vals = jax.random.uniform(k_dense, (B, N_DENSE), jnp.float32)
    x = jnp.concatenate([ids, dense_vals], axis=1)          # (B, N_FEAT)

    emb_tables, params = init_params(k_params)

    out = autoint_forward(x, emb_tables, params)
    jax.block_until_ready(out)

    ref = reference_forward(x, emb_tables, params)
    assert out.shape == (B,)
    assert jnp.allclose(out, ref, atol=1e-5, rtol=1e-4), (out, ref)
    # TODO(synk): nn.Dropout layers are treated as identity (eval-mode semantics).
    print("KERNEL_OK")
</pallas_src>

<mosaic_0001>
module attributes {stable_mosaic.version = 11 : i64} {
  func.func @autoint_kernel(%arg0: i32, %arg1: memref<56x32xf32, #tpu.memory_space<vmem>>, %arg2: memref<176x35xf32, #tpu.memory_space<vmem>>, %arg3: memref<1x8xf32, #tpu.memory_space<vmem>>) attributes {dimension_semantics = [#tpu.dimension_semantics<arbitrary>], iteration_bounds = array<i64: 1>, scalar_prefetch = 0 : i64, scratch_operands = 0 : i64, tpu.core_type = #tpu.core_type<tc>, window_params = [{pipeline_mode = #tpu.pipeline_mode<synchronous>, transform_indices = @transform_0, window_bounds = array<i64: 56, 32>}, {pipeline_mode = #tpu.pipeline_mode<synchronous>, transform_indices = @transform_1, window_bounds = array<i64: 176, 35>}, {pipeline_mode = #tpu.pipeline_mode<synchronous>, transform_indices = @transform_2, window_bounds = array<i64: 1, 8>}]} {
    %c0 = arith.constant 0 : index
    %c0_0 = arith.constant 0 : index
    %0 = vector.load %arg1[%c0, %c0_0] : memref<56x32xf32, #tpu.memory_space<vmem>>, vector<8x32xf32>
    %c8 = arith.constant 8 : index
    %c0_1 = arith.constant 0 : index
    %1 = vector.load %arg1[%c8, %c0_1] : memref<56x32xf32, #tpu.memory_space<vmem>>, vector<7x8xf32>
    %c16 = arith.constant 16 : index
    %c0_2 = arith.constant 0 : index
    %2 = vector.load %arg1[%c16, %c0_2] : memref<56x32xf32, #tpu.memory_space<vmem>>, vector<35x8xf32>
    %c96 = arith.constant 96 : index
    %c0_3 = arith.constant 0 : index
    %3 = vector.load %arg2[%c96, %c0_3] : memref<176x35xf32, #tpu.memory_space<vmem>>, vector<32x35xf32>
    %c128 = arith.constant 128 : index
    %c0_4 = arith.constant 0 : index
    %4 = vector.load %arg2[%c128, %c0_4] : memref<176x35xf32, #tpu.memory_space<vmem>>, vector<16x32xf32>
    %c144 = arith.constant 144 : index
    %c0_5 = arith.constant 0 : index
    %5 = vector.load %arg2[%c144, %c0_5] : memref<176x35xf32, #tpu.memory_space<vmem>>, vector<8x32xf32>
    %c152 = arith.constant 152 : index
    %c0_6 = arith.constant 0 : index
    %6 = vector.load %arg2[%c152, %c0_6] : memref<176x35xf32, #tpu.memory_space<vmem>>, vector<1x16xf32>
    %c152_7 = arith.constant 152 : index
    %c16_8 = arith.constant 16 : index
    %7 = vector.load %arg2[%c152_7, %c16_8] : memref<176x35xf32, #tpu.memory_space<vmem>>, vector<1x7xf32>
    %c160 = arith.constant 160 : index
    %c0_9 = arith.constant 0 : index
    %8 = vector.load %arg2[%c160, %c0_9] : memref<176x35xf32, #tpu.memory_space<vmem>>, vector<16x1xf32>
    %cst = arith.constant dense<0.000000e+00> : vector<1x8xf32>
    %9 = tpu.matmul %7, %1, %cst {dimension_numbers = #tpu.dot_dimension_numbers<[1], [0], [0], [1], [0, 0, 1, 1], [], []>} : vector<1x7xf32>, vector<7x8xf32>, vector<1x8xf32> -> vector<1x8xf32>
    %cst_10 = arith.constant 0.000000e+00 : f32
    %10 = vector.broadcast %cst_10 : f32 to vector<1x8xf32>
    %11 = arith.maximumf %9, %10 : vector<1x8xf32>
    %cst_11 = arith.constant dense<0.000000e+00> : vector<32x8xf32>
    %12 = tpu.matmul %3, %2, %cst_11 {dimension_numbers = #tpu.dot_dimension_numbers<[1], [0], [0], [1], [0, 0, 1, 1], [], []>} : vector<32x35xf32>, vector<35x8xf32>, vector<32x8xf32> -> vector<32x8xf32>
    %cst_12 = arith.constant 0.000000e+00 : f32
    %13 = vector.broadcast %cst_12 : f32 to vector<32x8xf32>
    %14 = arith.maximumf %12, %13 : vector<32x8xf32>
    %cst_13 = arith.constant dense<0.000000e+00> : vector<16x8xf32>
    %15 = tpu.matmul %4, %14, %cst_13 {dimension_numbers = #tpu.dot_dimension_numbers<[1], [0], [0], [1], [0, 0, 1, 1], [], []>} : vector<16x32xf32>, vector<32x8xf32>, vector<16x8xf32> -> vector<16x8xf32>
    %16 = vector.broadcast %8 : vector<16x1xf32> to vector<16x8xf32>
    %17 = arith.addf %15, %16 : vector<16x8xf32>
    %cst_14 = arith.constant 0.000000e+00 : f32
    %18 = vector.broadcast %cst_14 : f32 to vector<16x8xf32>
    %19 = arith.maximumf %17, %18 : vector<16x8xf32>
    %cst_15 = arith.constant dense<0.000000e+00> : vector<1x8xf32>
    %20 = tpu.matmul %6, %19, %cst_15 {dimension_numbers = #tpu.dot_dimension_numbers<[1], [0], [0], [1], [0, 0, 1, 1], [], []>} : vector<1x16xf32>, vector<16x8xf32>, vector<1x8xf32> -> vector<1x8xf32>
    %21 = tpu.iota {dimensions = array<i32: 0>} : vector<32x32xi32>
    %22 = tpu.iota {dimensions = array<i32: 1>} : vector<32x32xi32>
    %c2_i32 = arith.constant 2 : i32
    %23 = vector.broadcast %c2_i32 : i32 to vector<32x32xi32>
    %24 = arith.shrsi %21, %23 : vector<32x32xi32>
    %c2_i32_16 = arith.constant 2 : i32
    %25 = vector.broadcast %c2_i32_16 : i32 to vector<32x32xi32>
    %26 = arith.shrsi %22, %25 : vector<32x32xi32>
    %27 = arith.cmpi eq, %24, %26 : vector<32x32xi32>
    %cst_17 = arith.constant 0.000000e+00 : f32
    %cst_18 = arith.constant -1.000000e+30 : f32
    %28 = vector.broadcast %cst_17 : f32 to vector<32x32xf32>
    %29 = vector.broadcast %cst_18 : f32 to vector<32x32xf32>
    %30 = arith.select %27, %28, %29 : vector<32x32xi1>, vector<32x32xf32>
    %c0_19 = arith.constant 0 : index
    %c0_20 = arith.constant 0 : index
    %31 = vector.load %arg2[%c0_19, %c0_20] : memref<176x35xf32, #tpu.memory_space<vmem>>, vector<32x8xf32>
    %cst_21 = arith.constant dense<0.000000e+00> : vector<32x32xf32>
    %32 = tpu.matmul %31, %0, %cst_21 {dimension_numbers = #tpu.dot_dimension_numbers<[1], [0], [0], [1], [0, 0, 1, 1], [], []>} : vector<32x8xf32>, vector<8x32xf32>, vector<32x32xf32> -> vector<32x32xf32>
    %33 = vector.extract_strided_slice %32 {offsets = [0, 0], sizes = [8, 32], strides = [1, 1]} : vector<32x32xf32> to vector<8x32xf32>
    %34 = vector.extract_strided_slice %32 {offsets = [8, 0], sizes = [8, 32], strides = [1, 1]} : vector<32x32xf32> to vector<8x32xf32>
    %35 = vector.extract_strided_slice %32 {offsets = [16, 0], sizes = [8, 32], strides = [1, 1]} : vector<32x32xf32> to vector<8x32xf32>
    %36 = vector.extract_strided_slice %32 {offsets = [24, 0], sizes = [8, 32], strides = [1, 1]} : vector<32x32xf32> to vector<8x32xf32>
    %37 = tpu.transpose %34, [1, 0] : vector<8x32xf32> -> vector<32x8xf32>
    %38 = vector.extract_strided_slice %37 {offsets = [0, 0], sizes = [32, 4], strides = [1, 1]} : vector<32x8xf32> to vector<32x4xf32>
    %39 = vector.extract_strided_slice %33 {offsets = [0, 0], sizes = [4, 32], strides = [1, 1]} : vector<8x32xf32> to vector<4x32xf32>
    %cst_22 = arith.constant dense<0.000000e+00> : vector<32x32xf32>
    %40 = tpu.matmul %38, %39, %cst_22 {dimension_numbers = #tpu.dot_dimension_numbers<[1], [0], [0], [1], [0, 0, 1, 1], [], []>} : vector<32x4xf32>, vector<4x32xf32>, vector<32x32xf32> -> vector<32x32xf32>
    %41 = arith.addf %40, %30 : vector<32x32xf32>
    %cst_23 = arith.constant dense<0xFF800000> : vector<32xf32>
    %42 = vector.multi_reduction <maximumf>, %41, %cst_23 [0] : vector<32x32xf32> to vector<32xf32>
    %43 = vector.shape_cast %42 : vector<32xf32> to vector<1x32xf32>
    %44 = vector.broadcast %43 : vector<1x32xf32> to vector<32x32xf32>
    %45 = arith.subf %41, %44 : vector<32x32xf32>
    %46 = math.exp %45 : vector<32x32xf32>
    %cst_24 = arith.constant dense<0.000000e+00> : vector<32xf32>
    %47 = vector.multi_reduction <add>, %46, %cst_24 [0] : vector<32x32xf32> to vector<32xf32>
    %48 = vector.shape_cast %47 : vector<32xf32> to vector<1x32xf32>
    %49 = tpu.reciprocal %48 {approx = true} : vector<1x32xf32> -> vector<1x32xf32>
    %50 = vector.broadcast %49 : vector<1x32xf32> to vector<32x32xf32>
    %51 = arith.mulf %46, %50 : vector<32x32xf32>
    %52 = vector.extract_strided_slice %35 {offsets = [0, 0], sizes = [4, 32], strides = [1, 1]} : vector<8x32xf32> to vector<4x32xf32>
    %cst_25 = arith.constant dense<0.000000e+00> : vector<4x32xf32>
    %53 = tpu.matmul %52, %51, %cst_25 {dimension_numbers = #tpu.dot_dimension_numbers<[1], [0], [0], [1], [0, 0, 1, 1], [], []>} : vector<4x32xf32>, vector<32x32xf32>, vector<4x32xf32> -> vector<4x32xf32>
    %54 = vector.extract_strided_slice %37 {offsets = [0, 4], sizes = [32, 4], strides = [1, 1]} : vector<32x8xf32> to vector<32x4xf32>
    %55 = vector.extract_strided_slice %33 {offsets = [4, 0], sizes = [4, 32], strides = [1, 1]} : vector<8x32xf32> to vector<4x32xf32>
    %cst_26 = arith.constant dense<0.000000e+00> : vector<32x32xf32>
    %56 = tpu.matmul %54, %55, %cst_26 {dimension_numbers = #tpu.dot_dimension_numbers<[1], [0], [0], [1], [0, 0, 1, 1], [], []>} : vector<32x4xf32>, vector<4x32xf32>, vector<32x32xf32> -> vector<32x32xf32>
    %57 = arith.addf %56, %30 : vector<32x32xf32>
    %cst_27 = arith.constant dense<0xFF800000> : vector<32xf32>
    %58 = vector.multi_reduction <maximumf>, %57, %cst_27 [0] : vector<32x32xf32> to vector<32xf32>
    %59 = vector.shape_cast %58 : vector<32xf32> to vector<1x32xf32>
    %60 = vector.broadcast %59 : vector<1x32xf32> to vector<32x32xf32>
    %61 = arith.subf %57, %60 : vector<32x32xf32>
    %62 = math.exp %61 : vector<32x32xf32>
    %cst_28 = arith.constant dense<0.000000e+00> : vector<32xf32>
    %63 = vector.multi_reduction <add>, %62, %cst_28 [0] : vector<32x32xf32> to vector<32xf32>
    %64 = vector.shape_cast %63 : vector<32xf32> to vector<1x32xf32>
    %65 = tpu.reciprocal %64 {approx = true} : vector<1x32xf32> -> vector<1x32xf32>
    %66 = vector.broadcast %65 : vector<1x32xf32> to vector<32x32xf32>
    %67 = arith.mulf %62, %66 : vector<32x32xf32>
    %68 = vector.extract_strided_slice %35 {offsets = [4, 0], sizes = [4, 32], strides = [1, 1]} : vector<8x32xf32> to vector<4x32xf32>
    %cst_29 = arith.constant dense<0.000000e+00> : vector<4x32xf32>
    %69 = tpu.matmul %68, %67, %cst_29 {dimension_numbers = #tpu.dot_dimension_numbers<[1], [0], [0], [1], [0, 0, 1, 1], [], []>} : vector<4x32xf32>, vector<32x32xf32>, vector<4x32xf32> -> vector<4x32xf32>
    %70 = tpu.concatenate %53, %69 in 0 : vector<4x32xf32>, vector<4x32xf32> -> vector<8x32xf32>
    %71 = arith.addf %70, %36 : vector<8x32xf32>
    %cst_30 = arith.constant 0.000000e+00 : f32
    %72 = vector.broadcast %cst_30 : f32 to vector<8x32xf32>
    %73 = arith.maximumf %71, %72 : vector<8x32xf32>
    %c32 = arith.constant 32 : index
    %c0_31 = arith.constant 0 : index
    %74 = vector.load %arg2[%c32, %c0_31] : memref<176x35xf32, #tpu.memory_space<vmem>>, vector<32x8xf32>
    %cst_32 = arith.constant dense<0.000000e+00> : vector<32x32xf32>
    %75 = tpu.matmul %74, %73, %cst_32 {dimension_numbers = #tpu.dot_dimension_numbers<[1], [0], [0], [1], [0, 0, 1, 1], [], []>} : vector<32x8xf32>, vector<8x32xf32>, vector<32x32xf32> -> vector<32x32xf32>
    %76 = vector.extract_strided_slice %75 {offsets = [0, 0], sizes = [8, 32], strides = [1, 1]} : vector<32x32xf32> to vector<8x32xf32>
    %77 = vector.extract_strided_slice %75 {offsets = [8, 0], sizes = [8, 32], strides = [1, 1]} : vector<32x32xf32> to vector<8x32xf32>
    %78 = vector.extract_strided_slice %75 {offsets = [16, 0], sizes = [8, 32], strides = [1, 1]} : vector<32x32xf32> to vector<8x32xf32>
    %79 = vector.extract_strided_slice %75 {offsets = [24, 0], sizes = [8, 32], strides = [1, 1]} : vector<32x32xf32> to vector<8x32xf32>
    %80 = tpu.transpose %77, [1, 0] : vector<8x32xf32> -> vector<32x8xf32>
    %81 = vector.extract_strided_slice %80 {offsets = [0, 0], sizes = [32, 4], strides = [1, 1]} : vector<32x8xf32> to vector<32x4xf32>
    %82 = vector.extract_strided_slice %76 {offsets = [0, 0], sizes = [4, 32], strides = [1, 1]} : vector<8x32xf32> to vector<4x32xf32>
    %cst_33 = arith.constant dense<0.000000e+00> : vector<32x32xf32>
    %83 = tpu.matmul %81, %82, %cst_33 {dimension_numbers = #tpu.dot_dimension_numbers<[1], [0], [0], [1], [0, 0, 1, 1], [], []>} : vector<32x4xf32>, vector<4x32xf32>, vector<32x32xf32> -> vector<32x32xf32>
    %84 = arith.addf %83, %30 : vector<32x32xf32>
    %cst_34 = arith.constant dense<0xFF800000> : vector<32xf32>
    %85 = vector.multi_reduction <maximumf>, %84, %cst_34 [0] : vector<32x32xf32> to vector<32xf32>
    %86 = vector.shape_cast %85 : vector<32xf32> to vector<1x32xf32>
    %87 = vector.broadcast %86 : vector<1x32xf32> to vector<32x32xf32>
    %88 = arith.subf %84, %87 : vector<32x32xf32>
    %89 = math.exp %88 : vector<32x32xf32>
    %cst_35 = arith.constant dense<0.000000e+00> : vector<32xf32>
    %90 = vector.multi_reduction <add>, %89, %cst_35 [0] : vector<32x32xf32> to vector<32xf32>
    %91 = vector.shape_cast %90 : vector<32xf32> to vector<1x32xf32>
    %92 = tpu.reciprocal %91 {approx = true} : vector<1x32xf32> -> vector<1x32xf32>
    %93 = vector.broadcast %92 : vector<1x32xf32> to vector<32x32xf32>
    %94 = arith.mulf %89, %93 : vector<32x32xf32>
    %95 = vector.extract_strided_slice %78 {offsets = [0, 0], sizes = [4, 32], strides = [1, 1]} : vector<8x32xf32> to vector<4x32xf32>
    %cst_36 = arith.constant dense<0.000000e+00> : vector<4x32xf32>
    %96 = tpu.matmul %95, %94, %cst_36 {dimension_numbers = #tpu.dot_dimension_numbers<[1], [0], [0], [1], [0, 0, 1, 1], [], []>} : vector<4x32xf32>, vector<32x32xf32>, vector<4x32xf32> -> vector<4x32xf32>
    %97 = vector.extract_strided_slice %80 {offsets = [0, 4], sizes = [32, 4], strides = [1, 1]} : vector<32x8xf32> to vector<32x4xf32>
    %98 = vector.extract_strided_slice %76 {offsets = [4, 0], sizes = [4, 32], strides = [1, 1]} : vector<8x32xf32> to vector<4x32xf32>
    %cst_37 = arith.constant dense<0.000000e+00> : vector<32x32xf32>
    %99 = tpu.matmul %97, %98, %cst_37 {dimension_numbers = #tpu.dot_dimension_numbers<[1], [0], [0], [1], [0, 0, 1, 1], [], []>} : vector<32x4xf32>, vector<4x32xf32>, vector<32x32xf32> -> vector<32x32xf32>
    %100 = arith.addf %99, %30 : vector<32x32xf32>
    %cst_38 = arith.constant dense<0xFF800000> : vector<32xf32>
    %101 = vector.multi_reduction <maximumf>, %100, %cst_38 [0] : vector<32x32xf32> to vector<32xf32>
    %102 = vector.shape_cast %101 : vector<32xf32> to vector<1x32xf32>
    %103 = vector.broadcast %102 : vector<1x32xf32> to vector<32x32xf32>
    %104 = arith.subf %100, %103 : vector<32x32xf32>
    %105 = math.exp %104 : vector<32x32xf32>
    %cst_39 = arith.constant dense<0.000000e+00> : vector<32xf32>
    %106 = vector.multi_reduction <add>, %105, %cst_39 [0] : vector<32x32xf32> to vector<32xf32>
    %107 = vector.shape_cast %106 : vector<32xf32> to vector<1x32xf32>
    %108 = tpu.reciprocal %107 {approx = true} : vector<1x32xf32> -> vector<1x32xf32>
    %109 = vector.broadcast %108 : vector<1x32xf32> to vector<32x32xf32>
    %110 = arith.mulf %105, %109 : vector<32x32xf32>
    %111 = vector.extract_strided_slice %78 {offsets = [4, 0], sizes = [4, 32], strides = [1, 1]} : vector<8x32xf32> to vector<4x32xf32>
    %cst_40 = arith.constant dense<0.000000e+00> : vector<4x32xf32>
    %112 = tpu.matmul %111, %110, %cst_40 {dimension_numbers = #tpu.dot_dimension_numbers<[1], [0], [0], [1], [0, 0, 1, 1], [], []>} : vector<4x32xf32>, vector<32x32xf32>, vector<4x32xf32> -> vector<4x32xf32>
    %113 = tpu.concatenate %96, %112 in 0 : vector<4x32xf32>, vector<4x32xf32> -> vector<8x32xf32>
    %114 = arith.addf %113, %79 : vector<8x32xf32>
    %cst_41 = arith.constant 0.000000e+00 : f32
    %115 = vector.broadcast %cst_41 : f32 to vector<8x32xf32>
    %116 = arith.maximumf %114, %115 : vector<8x32xf32>
    %c64 = arith.constant 64 : index
    %c0_42 = arith.constant 0 : index
    %117 = vector.load %arg2[%c64, %c0_42] : memref<176x35xf32, #tpu.memory_space<vmem>>, vector<32x8xf32>
    %cst_43 = arith.constant dense<0.000000e+00> : vector<32x32xf32>
    %118 = tpu.matmul %117, %116, %cst_43 {dimension_numbers = #tpu.dot_dimension_numbers<[1], [0], [0], [1], [0, 0, 1, 1], [], []>} : vector<32x8xf32>, vector<8x32xf32>, vector<32x32xf32> -> vector<32x32xf32>
    %119 = vector.extract_strided_slice %118 {offsets = [0, 0], sizes = [8, 32], strides = [1, 1]} : vector<32x32xf32> to vector<8x32xf32>
    %120 = vector.extract_strided_slice %118 {offsets = [8, 0], sizes = [8, 32], strides = [1, 1]} : vector<32x32xf32> to vector<8x32xf32>
    %121 = vector.extract_strided_slice %118 {offsets = [16, 0], sizes = [8, 32], strides = [1, 1]} : vector<32x32xf32> to vector<8x32xf32>
    %122 = vector.extract_strided_slice %118 {offsets = [24, 0], sizes = [8, 32], strides = [1, 1]} : vector<32x32xf32> to vector<8x32xf32>
    %123 = tpu.transpose %120, [1, 0] : vector<8x32xf32> -> vector<32x8xf32>
    %124 = vector.extract_strided_slice %123 {offsets = [0, 0], sizes = [32, 4], strides = [1, 1]} : vector<32x8xf32> to vector<32x4xf32>
    %125 = vector.extract_strided_slice %119 {offsets = [0, 0], sizes = [4, 32], strides = [1, 1]} : vector<8x32xf32> to vector<4x32xf32>
    %cst_44 = arith.constant dense<0.000000e+00> : vector<32x32xf32>
    %126 = tpu.matmul %124, %125, %cst_44 {dimension_numbers = #tpu.dot_dimension_numbers<[1], [0], [0], [1], [0, 0, 1, 1], [], []>} : vector<32x4xf32>, vector<4x32xf32>, vector<32x32xf32> -> vector<32x32xf32>
    %127 = arith.addf %126, %30 : vector<32x32xf32>
    %cst_45 = arith.constant dense<0xFF800000> : vector<32xf32>
    %128 = vector.multi_reduction <maximumf>, %127, %cst_45 [0] : vector<32x32xf32> to vector<32xf32>
    %129 = vector.shape_cast %128 : vector<32xf32> to vector<1x32xf32>
    %130 = vector.broadcast %129 : vector<1x32xf32> to vector<32x32xf32>
    %131 = arith.subf %127, %130 : vector<32x32xf32>
    %132 = math.exp %131 : vector<32x32xf32>
    %cst_46 = arith.constant dense<0.000000e+00> : vector<32xf32>
    %133 = vector.multi_reduction <add>, %132, %cst_46 [0] : vector<32x32xf32> to vector<32xf32>
    %134 = vector.shape_cast %133 : vector<32xf32> to vector<1x32xf32>
    %135 = tpu.reciprocal %134 {approx = true} : vector<1x32xf32> -> vector<1x32xf32>
    %136 = vector.broadcast %135 : vector<1x32xf32> to vector<32x32xf32>
    %137 = arith.mulf %132, %136 : vector<32x32xf32>
    %138 = vector.extract_strided_slice %121 {offsets = [0, 0], sizes = [4, 32], strides = [1, 1]} : vector<8x32xf32> to vector<4x32xf32>
    %cst_47 = arith.constant dense<0.000000e+00> : vector<4x32xf32>
    %139 = tpu.matmul %138, %137, %cst_47 {dimension_numbers = #tpu.dot_dimension_numbers<[1], [0], [0], [1], [0, 0, 1, 1], [], []>} : vector<4x32xf32>, vector<32x32xf32>, vector<4x32xf32> -> vector<4x32xf32>
    %140 = vector.extract_strided_slice %123 {offsets = [0, 4], sizes = [32, 4], strides = [1, 1]} : vector<32x8xf32> to vector<32x4xf32>
    %141 = vector.extract_strided_slice %119 {offsets = [4, 0], sizes = [4, 32], strides = [1, 1]} : vector<8x32xf32> to vector<4x32xf32>
    %cst_48 = arith.constant dense<0.000000e+00> : vector<32x32xf32>
    %142 = tpu.matmul %140, %141, %cst_48 {dimension_numbers = #tpu.dot_dimension_numbers<[1], [0], [0], [1], [0, 0, 1, 1], [], []>} : vector<32x4xf32>, vector<4x32xf32>, vector<32x32xf32> -> vector<32x32xf32>
    %143 = arith.addf %142, %30 : vector<32x32xf32>
    %cst_49 = arith.constant dense<0xFF800000> : vector<32xf32>
    %144 = vector.multi_reduction <maximumf>, %143, %cst_49 [0] : vector<32x32xf32> to vector<32xf32>
    %145 = vector.shape_cast %144 : vector<32xf32> to vector<1x32xf32>
    %146 = vector.broadcast %145 : vector<1x32xf32> to vector<32x32xf32>
    %147 = arith.subf %143, %146 : vector<32x32xf32>
    %148 = math.exp %147 : vector<32x32xf32>
    %cst_50 = arith.constant dense<0.000000e+00> : vector<32xf32>
    %149 = vector.multi_reduction <add>, %148, %cst_50 [0] : vector<32x32xf32> to vector<32xf32>
    %150 = vector.shape_cast %149 : vector<32xf32> to vector<1x32xf32>
    %151 = tpu.reciprocal %150 {approx = true} : vector<1x32xf32> -> vector<1x32xf32>
    %152 = vector.broadcast %151 : vector<1x32xf32> to vector<32x32xf32>
    %153 = arith.mulf %148, %152 : vector<32x32xf32>
    %154 = vector.extract_strided_slice %121 {offsets = [4, 0], sizes = [4, 32], strides = [1, 1]} : vector<8x32xf32> to vector<4x32xf32>
    %cst_51 = arith.constant dense<0.000000e+00> : vector<4x32xf32>
    %155 = tpu.matmul %154, %153, %cst_51 {dimension_numbers = #tpu.dot_dimension_numbers<[1], [0], [0], [1], [0, 0, 1, 1], [], []>} : vector<4x32xf32>, vector<32x32xf32>, vector<4x32xf32> -> vector<4x32xf32>
    %156 = tpu.concatenate %139, %155 in 0 : vector<4x32xf32>, vector<4x32xf32> -> vector<8x32xf32>
    %157 = arith.addf %156, %122 : vector<8x32xf32>
    %cst_52 = arith.constant 0.000000e+00 : f32
    %158 = vector.broadcast %cst_52 : f32 to vector<8x32xf32>
    %159 = arith.maximumf %157, %158 : vector<8x32xf32>
    %160 = arith.mulf %159, %5 : vector<8x32xf32>
    %cst_53 = arith.constant dense<0.000000e+00> : vector<32xf32>
    %161 = vector.multi_reduction <add>, %160, %cst_53 [0] : vector<8x32xf32> to vector<32xf32>
    %162 = vector.shape_cast %161 : vector<32xf32> to vector<1x32xf32>
    %163 = tpu.iota {dimensions = array<i32: 0>} : vector<32x8xi32>
    %164 = tpu.iota {dimensions = array<i32: 1>} : vector<32x8xi32>
    %c2_i32_54 = arith.constant 2 : i32
    %165 = vector.broadcast %c2_i32_54 : i32 to vector<32x8xi32>
    %166 = arith.shrsi %163, %165 : vector<32x8xi32>
    %167 = arith.cmpi eq, %166, %164 : vector<32x8xi32>
    %168 = arith.extui %167 : vector<32x8xi1> to vector<32x8xi32>
    %169 = arith.sitofp %168 : vector<32x8xi32> to vector<32x8xf32>
    %cst_55 = arith.constant dense<0.000000e+00> : vector<1x8xf32>
    %170 = tpu.matmul %162, %169, %cst_55 {dimension_numbers = #tpu.dot_dimension_numbers<[1], [0], [0], [1], [0, 0, 1, 1], [], []>} : vector<1x32xf32>, vector<32x8xf32>, vector<1x8xf32> -> vector<1x8xf32>
    %171 = arith.addf %20, %170 : vector<1x8xf32>
    %172 = arith.addf %11, %171 : vector<1x8xf32>
    %cst_56 = arith.constant 0.000000e+00 : f32
    %173 = vector.broadcast %cst_56 : f32 to vector<1x8xf32>
    %174 = arith.subf %173, %172 : vector<1x8xf32>
    %175 = math.exp %174 : vector<1x8xf32>
    %cst_57 = arith.constant 1.000000e+00 : f32
    %176 = vector.broadcast %cst_57 : f32 to vector<1x8xf32>
    %177 = arith.addf %176, %175 : vector<1x8xf32>
    %cst_58 = arith.constant 1.000000e+00 : f32
    %178 = vector.broadcast %cst_58 : f32 to vector<1x8xf32>
    %179 = arith.divf %178, %177 : vector<1x8xf32>
    %c0_59 = arith.constant 0 : index
    %c0_60 = arith.constant 0 : index
    %180 = vector.load %arg3[%c0_59, %c0_60] : memref<1x8xf32, #tpu.memory_space<vmem>>, vector<1x8xf32>
    tpu.vector_store %arg3[%c0_59, %c0_60], %179 {strides = array<i32>} : memref<1x8xf32, #tpu.memory_space<vmem>>, vector<1x8xf32>,
    return
  }
  func.func @transform_0(%arg0: i32) -> (i32, i32) {
    %c0_i32 = arith.constant 0 : i32
    %c0_i32_0 = arith.constant 0 : i32
    %c0_i32_1 = arith.constant 0 : i32
    return %c0_i32, %c0_i32_0 : i32, i32
  }
  func.func @transform_1(%arg0: i32) -> (i32, i32) {
    %c0_i32 = arith.constant 0 : i32
    %c0_i32_0 = arith.constant 0 : i32
    %c0_i32_1 = arith.constant 0 : i32
    return %c0_i32, %c0_i32_0 : i32, i32
  }
  func.func @transform_2(%arg0: i32) -> (i32, i32) {
    %c0_i32 = arith.constant 0 : i32
    %c0_i32_0 = arith.constant 0 : i32
    %c0_i32_1 = arith.constant 0 : i32
    return %c0_i32, %c0_i32_0 : i32, i32
  }
}

</mosaic_0001>

<bundles_post_ra>
// kernel: tpu_custom_call.1
= control target key start
LH: loop header
LB: loop body
LE: loop exit
PB: predicated region body
PF: predicated region fallthrough
CT: control target
= control target key end

     0   :  { %vm176_vm0 = vcmask 64512   ;;  %vm35_vm1 = vcmask 1046528   ;;  %s1367_s17 = smov 112   ;;  %s1697_s0 = inlined_call_operand.vmem [shape: f32[56,32], index: 0, kind: input, shape index: {}]   ;;  %s1698_s1 = inlined_call_operand.vmem [shape: f32[176,35], index: 1, kind: input, shape index: {}]   ;;  %s1699_s2 = inlined_call_operand.hbm [shape: f32[1,8], index: 2, kind: output, shape index: {}]  }
   0x1   :  { %v12_v0 = vld [vmem:[%s1697_s0] sm:$0xff]  ;;  %v26_v2 = vld [vmem:[%s1698_s1 + $0x98] sm:$0x1]  ;;  %v13_v3 = vld [vmem:[%s1697_s0 + $0x8] sm:$0x7f] }
   0x2   :  { %v172_v1 = vld [vmem:[%s1698_s1] sm:$0xff]  ;;  %204 = vmatpush.msra.mxu3 %v12_v0  ;;  %30 = vrot.lane.b32.xlu0 %v26_v2, %s1367_s17 }
   0x3   :  { %1209 = vmatmul.msk.f32.vlgmr.msra.gmra.mxu3 %vm176_vm0, %v172_v1 }
   0x4   :  { %7 = vsyncpa [#allocation3], 0  ;;  %1200 = vmatpush.msk.msra.mxu0 %vm35_vm1, %v13_v3  ;;  %v173_v4 = vld [vmem:[%s1698_s1 + $0x8] sm:$0xff]  ;;  %vm32_vm2 = vcmask 56320   ;;  %vm263_vm3 = vcmask 1043456   ;;  %vm73_vm4 = vcmask 1042432   ;;  %v152_v27 = vlaneseq }
   0x5   :  { %v18_v8 = vld [vmem:[%s1697_s0 + $0x30] sm:$0x7]  ;;  %v17_v9 = vld [vmem:[%s1697_s0 + $0x28] sm:$0xff]  ;;  %v16_v10 = vld [vmem:[%s1697_s0 + $0x20] sm:$0xff]  ;;  %vm60_vm5 = vcmask 285696   ;;  %vm250_vm6 = vcmask 31744  }
   0x6   :  { %1202 = vmatpush.msk.msra.mxu1 %vm73_vm4, %v18_v8  ;;  %v15_v11 = vld [vmem:[%s1697_s0 + $0x18] sm:$0xff]  ;;  %v14_v12 = vld [vmem:[%s1697_s0 + $0x10] sm:$0xff]  ;;  %v19_v13 = vld [vmem:[%s1698_s1 + $0x60] sm:$0xff]  ;;  %s1368_s11 = smov 124   ;;  %v1450_v28 = vshrl.u32 %v152_v27, 7  ;;  %v1455_v35 = vand.u32 127, %v152_v27 }
   0x7   :  { %v20_v14 = vld [vmem:[%s1698_s1 + $0x68] sm:$0xff]  ;;  %v21_v15 = vld [vmem:[%s1698_s1 + $0x70] sm:$0xff]  ;;  %v22_v18 = vld [vmem:[%s1698_s1 + $0x78] sm:$0xff]  ;;  %v1369_v45 = vmov -1e+30   ;;  %vm120_vm11 = vcmask 261120  }
   0x8   :  { %89 = vmatpush.msra.mxu1 %v17_v9  ;;  %v174_v16 = vld [vmem:[%s1698_s1 + $0x10] sm:$0xff]  ;;  %v1453_v31 = vadd.s32 8, %v1450_v28  ;;  %v1458_v36 = vadd.s32 16, %v1450_v28  ;;  %v1462_v39 = vadd.s32 24, %v1450_v28  ;;  %v159_v40 = vshra.s32 %v1450_v28, 2  ;;  %s1191_s16 = sshll.u32 %s1699_s2, 4  ;;  %s1192_s16 = int_to_ptr.hbm [resolvable:$true] %s1191_s16 }
   0x9   :  { %v163_v41 = vshra.s32 %v1455_v35, 2  ;;  %vm1182_vm4 = vcmask 57344  }
   0xa   :  { %90 = vmatpush.msra.mxu1 %v16_v10  ;;  %v160_v38 = vshra.s32 %v1453_v31, 2  ;;  %v161_v42 = vshra.s32 %v1458_v36, 2  ;;  %v162_v43 = vshra.s32 %v1462_v39, 2  ;;  %vm1104_vm15 = vcmp.eq.s32.totalorder %v159_v40, %v1455_v35 }
   0xb   :  { %1210 = vmatmul.msk.f32.gmra.mxu3 %vm176_vm0, %v173_v4  ;;  %vm164_vm8 = vcmp.eq.s32.totalorder %v159_v40, %v163_v41  ;;  %v23_v4 = vld [vmem:[%s1698_s1 + $0x80] sm:$0xff] }
   0xc   :  { %91 = vmatpush.msra.mxu1 %v15_v11  ;;  %vm165_vm7 = vcmp.eq.s32.totalorder %v160_v38, %v163_v41  ;;  %vm166_vm9 = vcmp.eq.s32.totalorder %v161_v42, %v163_v41  ;;  %vm167_vm10 = vcmp.eq.s32.totalorder %v162_v43, %v163_v41  ;;  %v1478_v47 = vsel %vm164_vm8, 0.0, %v1369_v45 }
   0xd   :  { %v1474_v46 = vsel %vm165_vm7, 0.0, %v1369_v45  ;;  %v1480_v48 = vsel %vm166_vm9, 0.0, %v1369_v45  ;;  %v1483_v50 = vsel %vm167_vm10, 0.0, %v1369_v45  ;;  %vm1107_vm12 = vcmp.eq.s32.totalorder %v162_v43, %v1455_v35 }
   0xe   :  { %92 = vmatpush.msra.mxu1 %v14_v12  ;;  %vm1106_vm13 = vcmp.eq.s32.totalorder %v161_v42, %v1455_v35  ;;  %vm1105_vm14 = vcmp.eq.s32.totalorder %v160_v38, %v1455_v35 }
   0xf   :  { %1203 = vmatmul.msk.f32.vlgmr.msra.gmra.mxu1 %vm60_vm5, %v19_v13 }
  0x13   :  { %1211 = vmatmul.msk.f32.gmra.mxu3 %vm176_vm0, %v174_v16 }
  0x17   :  { %1204 = vmatmul.msk.f32.gmra.mxu1 %vm60_vm5, %v20_v14  ;;  %v24_v14 = vld [vmem:[%s1698_s1 + $0x88] sm:$0xff] }
  0x1f   :  { %1205 = vmatmul.msk.f32.gmra.mxu1 %vm60_vm5, %v21_v15 }
  0x27   :  { %1206 = vmatmul.msk.f32.gmra.mxu1 %vm60_vm5, %v22_v18 }
  0x74   :  { %v31_v5 = vpop.permute.xlu0 %30 }
  0x75   :  { %1201 = vmatmul.msk.f32.vlgmr.msra.gmra.mxu0 %vm32_vm2, %v31_v5 }
  0x86   :  { %v1405_v6 = vpop.f32.mrf.mxu3 }
  0x87   :  { %1213 = vmatpush.msk.msrb.mxu0 %vm263_vm3, %v1405_v6 }
  0x8c   :  { %v94_v22 = vpop.f32.mrf.mxu1 }
  0x8d   :  { %v106_v37 = vmax.f32 %v94_v22, 0.0 }
  0x8e   :  { %v209_v7 = vpop.f32.mrf.mxu3 }
  0x8f   :  { %218 = vxpose.xlu0.b32.start.end [1/1] (short) (narrow) %v209_v7, 32 }
  0x94   :  { %v97_v23 = vpop.f32.mrf.mxu1 }
  0x95   :  { %v107_v33 = vmax.f32 %v97_v23, 0.0 }
  0x9c   :  { %v100_v25 = vpop.f32.mrf.mxu1 }
  0x9d   :  { %v108_v34 = vmax.f32 %v100_v25, 0.0 }
  0xa4   :  { %v103_v29 = vpop.f32.mrf.mxu1 }
  0xa5   :  { %v109_v30 = vmax.f32 %v103_v29, 0.0 }
  0xa7   :  { %139 = vmatpush.msra.mxu2 %v109_v30 }
  0xa9   :  { %140 = vmatpush.msra.mxu2 %v108_v34 }
  0xab   :  { %141 = vmatpush.msra.mxu2 %v107_v33 }
  0xad   :  { %142 = vmatpush.msra.mxu2 %v106_v37 }
  0xae   :  { %1207 = vmatmul.msk.f32.vlgmr.msra.gmra.mxu2 %vm120_vm11, %v23_v4 }
  0xb6   :  { %1208 = vmatmul.msk.f32.gmra.mxu2 %vm120_vm11, %v24_v14 }
  0xf2   :  { %v1448_v24 = vpop.f32.mrf.mxu0 }
 0x133   :  { %v234_v17 = vpop.trf.xlu0 }
 0x134   :  { %1214 = vmatmul.msk.f32.vlgmr.msrb.gmra.mxu0 %vm250_vm6, %v234_v17  ;;  %362 = vrot.lane.b32.xlu1 %v234_v17, %s1368_s11 }
 0x13b   :  { %v235_v19 = vpop.trf.xlu0 }
 0x13c   :  { %1215 = vmatmul.msk.f32.gmra.mxu0 %vm250_vm6, %v235_v19  ;;  %364 = vrot.lane.b32.xlu1 %v235_v19, %s1368_s11 }
 0x143   :  { %v236_v20 = vpop.trf.xlu0 }
 0x144   :  { %1216 = vmatmul.msk.f32.gmra.mxu0 %vm250_vm6, %v236_v20  ;;  %366 = vrot.lane.b32.xlu2 %v236_v20, %s1368_s11 }
 0x14b   :  { %v237_v21 = vpop.trf.xlu0 }
 0x14c   :  { %1217 = vmatmul.msk.f32.gmra.mxu0 %vm250_vm6, %v237_v21  ;;  %368 = vrot.lane.b32.xlu2 %v237_v21, %s1368_s11 }
 0x1b1   :  { %v284_v26 = vpop.f32.mrf.mxu0 }
 0x1b2   :  { %v285_v51 = vadd.f32 %v284_v26, %v1478_v47 }
 0x1b4   :  { %v296_v56 = vsel %vm120_vm11, %v285_v51, -inf }
 0x1b9   :  { %v287_v32 = vpop.f32.mrf.mxu0 }
 0x1ba   :  { %v288_v49 = vadd.f32 %v287_v32, %v1474_v46 }
 0x1bc   :  { %v297_v54 = vsel %vm120_vm11, %v288_v49, -inf }
 0x1bd   :  { %v300_v59 = vmax.f32 %v296_v56, %v297_v54 }
 0x1c1   :  { %v290_v44 = vpop.f32.mrf.mxu0 }
 0x1c2   :  { %v291_v52 = vadd.f32 %v290_v44, %v1480_v48 }
 0x1c4   :  { %v298_v57 = vsel %vm120_vm11, %v291_v52, -inf }
 0x1c9   :  { %v293_v53 = vpop.f32.mrf.mxu0 }
 0x1ca   :  { %v294_v55 = vadd.f32 %v293_v53, %v1483_v50  ;;  %v363_v53 = vpop.permute.xlu1 %362 }
 0x1cc   :  { %v299_v58 = vsel %vm120_vm11, %v294_v55, -inf }
 0x1cd   :  { %v301_v60 = vmax.f32 %v298_v57, %v299_v58  ;;  %v1514_v57 = vpop.f32.mrf.mxu2 }
 0x1cf   :  { %v302_v61 = vmax.f32 %v300_v59, %v301_v60 }
 0x1d1   :  { %v303_v62 = vrot.slane %v302_v61, 4 }
 0x1d2   :  { %v365_v54 = vpop.permute.xlu1 %364 }
 0x1d3   :  { %v304_v63 = vmax.f32 %v302_v61, %v303_v62 }
 0x1d5   :  { %v305_v0 = vrot.slane %v304_v63, 2 }
 0x1d7   :  { %v306_v1 = vmax.f32 %v304_v63, %v305_v0 }
 0x1d9   :  { %v307_v2 = vrot.slane %v306_v1, 1 }
 0x1db   :  { %v308_v3 = vmax.f32 %v306_v1, %v307_v2 }
 0x1dd   :  { %v309_v5 = vsub.f32 %v285_v51, %v308_v3  ;;  %v310_v7 = vsub.f32 %v288_v49, %v308_v3  ;;  %v311_v8 = vsub.f32 %v291_v52, %v308_v3  ;;  %v312_v9 = vsub.f32 %v294_v55, %v308_v3  ;;  %v1504_v49 = vpop.f32.mrf.mxu3  ;;  %v367_v55 = vpop.permute.xlu2 %366 }
 0x1de   :  { %v370_v52 = vrot.slane %v1405_v6, 4  ;;  %v1516_v6 = vpop.f32.mrf.mxu2 }
 0x1df   :  { %v313_v10 = vmul.f32 1.442695, %v309_v5  ;;  %v315_v11 = vmul.f32 1.442695, %v310_v7  ;;  %v317_v12 = vmul.f32 1.442695, %v311_v8 }
 0x1e0   :  { %v319_v13 = vmul.f32 1.442695, %v312_v9 }
 0x1e1   :  { %1276 = vpow2.f32 %v313_v10 }
 0x1e2   :  { %1278 = vpow2.f32 %v315_v11 }
 0x1e3   :  { %1280 = vpow2.f32 %v317_v12 }
 0x1e4   :  { %1282 = vpow2.f32 %v319_v13 }
 0x1e5   :  { %v369_v56 = vpop.permute.xlu2 %368 }
 0x1e7   :  { %v1277_v15 = vpop.eup %1276 }
 0x1e8   :  { %v1279_v16 = vpop.eup %1278  ;;  %v321_v17 = vsel %vm120_vm11, %v1277_v15, 0.0 }
 0x1e9   :  { %v1281_v18 = vpop.eup %1280  ;;  %v322_v19 = vsel %vm120_vm11, %v1279_v16, 0.0 }
 0x1ea   :  { %v1283_v20 = vpop.eup %1282  ;;  %v323_v21 = vadd.f32 %v322_v19, %v321_v17  ;;  %v324_v22 = vsel %vm120_vm11, %v1281_v18, 0.0  ;;  %v175_v17 = vld [vmem:[%s1698_s1 + $0x18] sm:$0xff] }
 0x1eb   :  { %v326_v25 = vsel %vm120_vm11, %v1283_v20, 0.0  ;;  %1212 = vmatmul.msk.f32.gmra.mxu3 %vm176_vm0, %v175_v17 }
 0x1ec   :  { %v325_v23 = vadd.f32 %v324_v22, %v323_v21 }
 0x1ee   :  { %v327_v26 = vadd.f32 %v326_v25, %v325_v23 }
 0x1f0   :  { %v328_v27 = vrot.slane %v327_v26, 4 }
 0x1f2   :  { %v329_v29 = vadd.f32 %v328_v27, %v327_v26 }
 0x1f4   :  { %v330_v30 = vrot.slane %v329_v29, 2 }
 0x1f6   :  { %v331_v32 = vadd.f32 %v330_v30, %v329_v29 }
 0x1f8   :  { %v332_v33 = vrot.slane %v331_v32, 1 }
 0x1fa   :  { %v333_v34 = vadd.f32 %v332_v33, %v331_v32 }
 0x1fc   :  { %1284 = vrcp.f32 %v333_v34 }
 0x202   :  { %v1285_v37 = vpop.eup %1284 }
 0x203   :  { %v338_v41 = vmul.f32 %v1285_v37, %v1283_v20  ;;  %v337_v44 = vmul.f32 %v1285_v37, %v1281_v18  ;;  %v336_v45 = vmul.f32 %v1285_v37, %v1279_v16  ;;  %v335_v51 = vmul.f32 %v1285_v37, %v1277_v15 }
 0x205   :  { %354 = vmatpush.msrb.mxu2 %v338_v41 }
 0x207   :  { %355 = vmatpush.msrb.mxu2 %v337_v44 }
 0x209   :  { %356 = vmatpush.msrb.mxu2 %v336_v45 }
 0x20b   :  { %357 = vmatpush.msrb.mxu2 %v335_v51 }
 0x20c   :  { %1218 = vmatmul.msk.f32.vlgmr.msrb.gmra.mxu2 %vm120_vm11, %v1504_v49 }
 0x20d   :  { %1219 = vmatpush.msk.msra.mxu2 %vm263_vm3, %v370_v52 }
 0x214   :  { %1220 = vmatmul.msk.f32.vlgmr.msra.gmra.mxu2 %vm250_vm6, %v363_v53 }
 0x21c   :  { %1221 = vmatmul.msk.f32.gmra.mxu2 %vm250_vm6, %v365_v54 }
 0x224   :  { %1222 = vmatmul.msk.f32.gmra.mxu2 %vm250_vm6, %v367_v55 }
 0x22c   :  { %1223 = vmatmul.msk.f32.gmra.mxu2 %vm250_vm6, %v369_v56 }
 0x28f   :  { %v1518_v58 = vpop.f32.mrf.mxu2 }
 0x297   :  { %v398_v59 = vpop.f32.mrf.mxu2 }
 0x298   :  { %v399_v63 = vadd.f32 %v398_v59, %v1478_v47 }
 0x29a   :  { %v410_v4 = vsel %vm120_vm11, %v399_v63, -inf }
 0x29f   :  { %v401_v60 = vpop.f32.mrf.mxu2 }
 0x2a0   :  { %v402_v62 = vadd.f32 %v401_v60, %v1474_v46 }
 0x2a2   :  { %v411_v2 = vsel %vm120_vm11, %v402_v62, -inf }
 0x2a3   :  { %v414_v8 = vmax.f32 %v410_v4, %v411_v2  ;;  %v215_v2 = vpop.f32.mrf.mxu3 }
 0x2a7   :  { %v404_v61 = vpop.f32.mrf.mxu2 }
 0x2a8   :  { %v405_v0 = vadd.f32 %v404_v61, %v1480_v48 }
 0x2aa   :  { %v412_v5 = vsel %vm120_vm11, %v405_v0, -inf }
 0x2af   :  { %v407_v1 = vpop.f32.mrf.mxu2 }
 0x2b0   :  { %v408_v3 = vadd.f32 %v407_v1, %v1483_v50  ;;  %v453_v1 = vrot.slane %v1504_v49, 4  ;;  %v483_v49 = vld [vmem:[%s1698_s1 + $0x28] sm:$0xff] }
 0x2b2   :  { %v413_v7 = vsel %vm120_vm11, %v408_v3, -inf }
 0x2b3   :  { %v415_v9 = vmax.f32 %v412_v5, %v413_v7 }
 0x2b5   :  { %v416_v10 = vmax.f32 %v414_v8, %v415_v9  ;;  %v482_v9 = vld [vmem:[%s1698_s1 + $0x20] sm:$0xff] }
 0x2b7   :  { %v417_v11 = vrot.slane %v416_v10, 4 }
 0x2b9   :  { %v418_v12 = vmax.f32 %v416_v10, %v417_v11  ;;  %v484_v11 = vld [vmem:[%s1698_s1 + $0x30] sm:$0xff] }
 0x2bb   :  { %v419_v13 = vrot.slane %v418_v12, 2 }
 0x2bd   :  { %v420_v14 = vmax.f32 %v418_v12, %v419_v13 }
 0x2bf   :  { %v421_v15 = vrot.slane %v420_v14, 1 }
 0x2c1   :  { %v422_v16 = vmax.f32 %v420_v14, %v421_v15 }
 0x2c3   :  { %v423_v18 = vsub.f32 %v399_v63, %v422_v16  ;;  %v424_v19 = vsub.f32 %v402_v62, %v422_v16  ;;  %v425_v20 = vsub.f32 %v405_v0, %v422_v16  ;;  %v426_v21 = vsub.f32 %v408_v3, %v422_v16 }
 0x2c5   :  { %v427_v22 = vmul.f32 1.442695, %v423_v18  ;;  %v429_v23 = vmul.f32 1.442695, %v424_v19  ;;  %v431_v25 = vmul.f32 1.442695, %v425_v20 }
 0x2c6   :  { %v433_v26 = vmul.f32 1.442695, %v426_v21 }
 0x2c7   :  { %1286 = vpow2.f32 %v427_v22 }
 0x2c8   :  { %1288 = vpow2.f32 %v429_v23 }
 0x2c9   :  { %1290 = vpow2.f32 %v431_v25 }
 0x2ca   :  { %1292 = vpow2.f32 %v433_v26 }
 0x2cd   :  { %v1287_v27 = vpop.eup %1286 }
 0x2ce   :  { %v1289_v29 = vpop.eup %1288  ;;  %v435_v30 = vsel %vm120_vm11, %v1287_v27, 0.0 }
 0x2cf   :  { %v1291_v32 = vpop.eup %1290  ;;  %v436_v33 = vsel %vm120_vm11, %v1289_v29, 0.0 }
 0x2d0   :  { %v1293_v34 = vpop.eup %1292  ;;  %v437_v37 = vadd.f32 %v436_v33, %v435_v30  ;;  %v438_v41 = vsel %vm120_vm11, %v1291_v32, 0.0 }
 0x2d1   :  { %v440_v45 = vsel %vm120_vm11, %v1293_v34, 0.0 }
 0x2d2   :  { %v439_v44 = vadd.f32 %v438_v41, %v437_v37 }
 0x2d4   :  { %v441_v51 = vadd.f32 %v440_v45, %v439_v44 }
 0x2d6   :  { %v442_v52 = vrot.slane %v441_v51, 4 }
 0x2d8   :  { %v443_v53 = vadd.f32 %v442_v52, %v441_v51 }
 0x2da   :  { %v444_v54 = vrot.slane %v443_v53, 2 }
 0x2dc   :  { %v445_v55 = vadd.f32 %v444_v54, %v443_v53 }
 0x2de   :  { %v446_v56 = vrot.slane %v445_v55, 1 }
 0x2e0   :  { %v447_v59 = vadd.f32 %v446_v56, %v445_v55 }
 0x2e2   :  { %1294 = vrcp.f32 %v447_v59 }
 0x2e8   :  { %v1295_v60 = vpop.eup %1294 }
 0x2e9   :  { %v452_v61 = vmul.f32 %v1295_v60, %v1293_v34  ;;  %v451_v62 = vmul.f32 %v1295_v60, %v1291_v32  ;;  %v450_v63 = vmul.f32 %v1295_v60, %v1289_v29  ;;  %v449_v0 = vmul.f32 %v1295_v60, %v1287_v27 }
 0x2eb   :  { %468 = vmatpush.msrb.mxu3 %v452_v61 }
 0x2ed   :  { %469 = vmatpush.msrb.mxu3 %v451_v62 }
 0x2ef   :  { %470 = vmatpush.msrb.mxu3 %v450_v63 }
 0x2f1   :  { %471 = vmatpush.msrb.mxu3 %v449_v0 }
 0x2f2   :  { %1224 = vmatmul.msk.f32.vlgmr.msrb.gmra.mxu3 %vm120_vm11, %v453_v1 }
 0x375   :  { %v473_v3 = vpop.f32.mrf.mxu3 }
 0x376   :  { %v477_v4 = vrot.slane %v473_v3, 4 }
 0x378   :  { %v479_v5 = vsel %vm263_vm3, %v1518_v58, %v477_v4 }
 0x379   :  { %v480_v7 = vadd.f32 %v479_v5, %v215_v2 }
 0x37b   :  { %v481_v8 = vmax.f32 %v480_v7, 0.0 }
 0x37d   :  { %513 = vmatpush.msra.mxu0 %v481_v8 }
 0x37e   :  { %1225 = vmatmul.msk.f32.vlgmr.msra.gmra.mxu0 %vm176_vm0, %v482_v9 }
 0x386   :  { %1226 = vmatmul.msk.f32.gmra.mxu0 %vm176_vm0, %v483_v49 }
 0x38e   :  { %1227 = vmatmul.msk.f32.gmra.mxu0 %vm176_vm0, %v484_v11 }
 0x3fb   :  { %v1548_v10 = vpop.f32.mrf.mxu0 }
 0x3fc   :  { %1229 = vmatpush.msk.msrb.mxu1 %vm263_vm3, %v1548_v10 }
 0x403   :  { %v518_v58 = vpop.f32.mrf.mxu0 }
 0x404   :  { %527 = vxpose.xlu1.b32.start.end [1/1] (short) (narrow) %v518_v58, 32 }
 0x4a8   :  { %v543_v12 = vpop.trf.xlu1 }
 0x4a9   :  { %1230 = vmatmul.msk.f32.vlgmr.msrb.gmra.mxu1 %vm250_vm6, %v543_v12  ;;  %669 = vrot.lane.b32.xlu2 %v543_v12, %s1368_s11 }
 0x4b0   :  { %v544_v13 = vpop.trf.xlu1 }
 0x4b1   :  { %1231 = vmatmul.msk.f32.gmra.mxu1 %vm250_vm6, %v544_v13  ;;  %671 = vrot.lane.b32.xlu2 %v544_v13, %s1368_s11 }
 0x4b8   :  { %v545_v14 = vpop.trf.xlu1 }
 0x4b9   :  { %1232 = vmatmul.msk.f32.gmra.mxu1 %vm250_vm6, %v545_v14  ;;  %673 = vrot.lane.b32.xlu2 %v545_v14, %s1368_s11 }
 0x4c0   :  { %v546_v15 = vpop.trf.xlu1 }
 0x4c1   :  { %1233 = vmatmul.msk.f32.gmra.mxu1 %vm250_vm6, %v546_v15  ;;  %675 = vrot.lane.b32.xlu2 %v546_v15, %s1368_s11 }
 0x526   :  { %v591_v16 = vpop.f32.mrf.mxu1 }
 0x527   :  { %v592_v20 = vadd.f32 %v591_v16, %v1478_v47 }
 0x529   :  { %v603_v26 = vsel %vm120_vm11, %v592_v20, -inf }
 0x52e   :  { %v594_v17 = vpop.f32.mrf.mxu1 }
 0x52f   :  { %v595_v19 = vadd.f32 %v594_v17, %v1474_v46 }
 0x531   :  { %v604_v23 = vsel %vm120_vm11, %v595_v19, -inf }
 0x532   :  { %v607_v30 = vmax.f32 %v603_v26, %v604_v23 }
 0x536   :  { %v597_v18 = vpop.f32.mrf.mxu1 }
 0x537   :  { %v598_v21 = vadd.f32 %v597_v18, %v1480_v48 }
 0x539   :  { %v605_v27 = vsel %vm120_vm11, %v598_v21, -inf }
 0x53e   :  { %v600_v22 = vpop.f32.mrf.mxu1 }
 0x53f   :  { %v601_v25 = vadd.f32 %v600_v22, %v1483_v50  ;;  %v670_v22 = vpop.permute.xlu2 %669 }
 0x541   :  { %v606_v29 = vsel %vm120_vm11, %v601_v25, -inf }
 0x542   :  { %v608_v32 = vmax.f32 %v605_v27, %v606_v29 }
 0x544   :  { %v609_v33 = vmax.f32 %v607_v30, %v608_v32 }
 0x546   :  { %v610_v34 = vrot.slane %v609_v33, 4 }
 0x547   :  { %v672_v23 = vpop.permute.xlu2 %671 }
 0x548   :  { %v611_v37 = vmax.f32 %v609_v33, %v610_v34 }
 0x54a   :  { %v612_v41 = vrot.slane %v611_v37, 2 }
 0x54c   :  { %v613_v44 = vmax.f32 %v611_v37, %v612_v41 }
 0x54e   :  { %v614_v45 = vrot.slane %v613_v44, 1 }
 0x550   :  { %v615_v51 = vmax.f32 %v613_v44, %v614_v45 }
 0x552   :  { %v616_v52 = vsub.f32 %v592_v20, %v615_v51  ;;  %v617_v53 = vsub.f32 %v595_v19, %v615_v51  ;;  %v618_v54 = vsub.f32 %v598_v21, %v615_v51  ;;  %v619_v55 = vsub.f32 %v601_v25, %v615_v51  ;;  %v1576_v19 = vpop.f32.mrf.mxu0  ;;  %v674_v25 = vpop.permute.xlu2 %673 }
 0x553   :  { %v677_v21 = vrot.slane %v1548_v10, 4 }
 0x554   :  { %v620_v56 = vmul.f32 1.442695, %v616_v52  ;;  %v622_v59 = vmul.f32 1.442695, %v617_v53  ;;  %v624_v60 = vmul.f32 1.442695, %v618_v54 }
 0x555   :  { %v626_v61 = vmul.f32 1.442695, %v619_v55 }
 0x556   :  { %1296 = vpow2.f32 %v620_v56 }
 0x557   :  { %1298 = vpow2.f32 %v622_v59 }
 0x558   :  { %1300 = vpow2.f32 %v624_v60 }
 0x559   :  { %1302 = vpow2.f32 %v626_v61 }
 0x55a   :  { %v676_v26 = vpop.permute.xlu2 %675 }
 0x55c   :  { %v1297_v62 = vpop.eup %1296 }
 0x55d   :  { %v1299_v63 = vpop.eup %1298  ;;  %v628_v0 = vsel %vm120_vm11, %v1297_v62, 0.0 }
 0x55e   :  { %v1301_v1 = vpop.eup %1300  ;;  %v629_v2 = vsel %vm120_vm11, %v1299_v63, 0.0 }
 0x55f   :  { %v1303_v3 = vpop.eup %1302  ;;  %v630_v4 = vadd.f32 %v629_v2, %v628_v0  ;;  %v631_v5 = vsel %vm120_vm11, %v1301_v1, 0.0 }
 0x560   :  { %v633_v8 = vsel %vm120_vm11, %v1303_v3, 0.0 }
 0x561   :  { %v632_v7 = vadd.f32 %v631_v5, %v630_v4 }
 0x563   :  { %v634_v9 = vadd.f32 %v633_v8, %v632_v7 }
 0x565   :  { %v635_v49 = vrot.slane %v634_v9, 4 }
 0x567   :  { %v636_v58 = vadd.f32 %v635_v49, %v634_v9 }
 0x569   :  { %v637_v11 = vrot.slane %v636_v58, 2 }
 0x56b   :  { %v638_v12 = vadd.f32 %v637_v11, %v636_v58 }
 0x56d   :  { %v639_v13 = vrot.slane %v638_v12, 1 }
 0x56f   :  { %v640_v14 = vadd.f32 %v639_v13, %v638_v12 }
 0x571   :  { %1304 = vrcp.f32 %v640_v14 }
 0x577   :  { %v1305_v15 = vpop.eup %1304 }
 0x578   :  { %v645_v16 = vmul.f32 %v1305_v15, %v1303_v3  ;;  %v644_v17 = vmul.f32 %v1305_v15, %v1301_v1  ;;  %v643_v18 = vmul.f32 %v1305_v15, %v1299_v63  ;;  %v642_v20 = vmul.f32 %v1305_v15, %v1297_v62 }
 0x57a   :  { %661 = vmatpush.msra.mxu3 %v645_v16 }
 0x57c   :  { %662 = vmatpush.msra.mxu3 %v644_v17  ;;  %v485_v17 = vld [vmem:[%s1698_s1 + $0x38] sm:$0xff] }
 0x57d   :  { %1228 = vmatmul.msk.f32.gmra.mxu0 %vm176_vm0, %v485_v17 }
 0x57e   :  { %663 = vmatpush.msra.mxu3 %v643_v18 }
 0x580   :  { %664 = vmatpush.msra.mxu3 %v642_v20 }
 0x581   :  { %1234 = vmatmul.msk.f32.vlgmr.msra.gmra.mxu3 %vm120_vm11, %v1576_v19 }
 0x582   :  { %1235 = vmatpush.msk.msrb.mxu3 %vm263_vm3, %v677_v21 }
 0x589   :  { %1236 = vmatmul.msk.f32.vlgmr.msrb.gmra.mxu3 %vm250_vm6, %v670_v22 }
 0x591   :  { %1237 = vmatmul.msk.f32.gmra.mxu3 %vm250_vm6, %v672_v23 }
 0x599   :  { %1238 = vmatmul.msk.f32.gmra.mxu3 %vm250_vm6, %v674_v25 }
 0x5a1   :  { %1239 = vmatmul.msk.f32.gmra.mxu3 %vm250_vm6, %v676_v26 }
 0x604   :  { %v1586_v27 = vpop.f32.mrf.mxu3 }
 0x60c   :  { %v705_v10 = vpop.f32.mrf.mxu3 }
 0x60d   :  { %v706_v33 = vadd.f32 %v705_v10, %v1478_v47 }
 0x60f   :  { %v717_v45 = vsel %vm120_vm11, %v706_v33, -inf }
 0x614   :  { %v708_v29 = vpop.f32.mrf.mxu3 }
 0x615   :  { %v709_v32 = vadd.f32 %v708_v29, %v1474_v46 }
 0x617   :  { %v718_v41 = vsel %vm120_vm11, %v709_v32, -inf }
 0x618   :  { %v721_v53 = vmax.f32 %v717_v45, %v718_v41  ;;  %v524_v45 = vpop.f32.mrf.mxu0 }
 0x61c   :  { %v711_v30 = vpop.f32.mrf.mxu3 }
 0x61d   :  { %v712_v34 = vadd.f32 %v711_v30, %v1480_v48 }
 0x61f   :  { %v719_v51 = vsel %vm120_vm11, %v712_v34, -inf }
 0x624   :  { %v714_v37 = vpop.f32.mrf.mxu3 }
 0x625   :  { %v715_v44 = vadd.f32 %v714_v37, %v1483_v50  ;;  %v760_v37 = vrot.slane %v1576_v19, 4  ;;  %v790_v19 = vld [vmem:[%s1698_s1 + $0x48] sm:$0xff] }
 0x627   :  { %v720_v52 = vsel %vm120_vm11, %v715_v44, -inf }
 0x628   :  { %v722_v54 = vmax.f32 %v719_v51, %v720_v52 }
 0x62a   :  { %v723_v55 = vmax.f32 %v721_v53, %v722_v54  ;;  %v789_v54 = vld [vmem:[%s1698_s1 + $0x40] sm:$0xff] }
 0x62c   :  { %v724_v56 = vrot.slane %v723_v55, 4 }
 0x62e   :  { %v725_v59 = vmax.f32 %v723_v55, %v724_v56  ;;  %v1370_v55 = vmov 0  }
 0x62f   :  { %1274 = vset.pattern.permute.xlu2 %v1370_v55 }
 0x630   :  { %v726_v60 = vrot.slane %v725_v59, 2 }
 0x632   :  { %v727_v61 = vmax.f32 %v725_v59, %v726_v60  ;;  %v27_v60 = vld [vmem:[%s1698_s1 + $0xa0] sm:$0xff] }
 0x634   :  { %v728_v62 = vrot.slane %v727_v61, 1 }
 0x636   :  { %v729_v63 = vmax.f32 %v727_v61, %v728_v62 }
 0x638   :  { %v730_v0 = vsub.f32 %v706_v33, %v729_v63  ;;  %v731_v1 = vsub.f32 %v709_v32, %v729_v63  ;;  %v732_v2 = vsub.f32 %v712_v34, %v729_v63  ;;  %v733_v3 = vsub.f32 %v715_v44, %v729_v63 }
 0x63a   :  { %v734_v4 = vmul.f32 1.442695, %v730_v0  ;;  %v736_v5 = vmul.f32 1.442695, %v731_v1  ;;  %v738_v7 = vmul.f32 1.442695, %v732_v2 }
 0x63b   :  { %v740_v8 = vmul.f32 1.442695, %v733_v3  ;;  %v28_v0 = vld [vmem:[%s1698_s1 + $0xa8] sm:$0xff] }
 0x63c   :  { %1306 = vpow2.f32 %v734_v4 }
 0x63d   :  { %1308 = vpow2.f32 %v736_v5 }
 0x63e   :  { %1310 = vpow2.f32 %v738_v7 }
 0x63f   :  { %1312 = vpow2.f32 %v740_v8 }
 0x642   :  { %v1307_v9 = vpop.eup %1306 }
 0x643   :  { %v1309_v49 = vpop.eup %1308  ;;  %v742_v58 = vsel %vm120_vm11, %v1307_v9, 0.0 }
 0x644   :  { %v1311_v11 = vpop.eup %1310  ;;  %v743_v12 = vsel %vm120_vm11, %v1309_v49, 0.0 }
 0x645   :  { %v1313_v13 = vpop.eup %1312  ;;  %v744_v14 = vadd.f32 %v743_v12, %v742_v58  ;;  %v745_v15 = vsel %vm120_vm11, %v1311_v11, 0.0 }
 0x646   :  { %v747_v18 = vsel %vm120_vm11, %v1313_v13, 0.0 }
 0x647   :  { %v746_v16 = vadd.f32 %v745_v15, %v744_v14 }
 0x649   :  { %v748_v20 = vadd.f32 %v747_v18, %v746_v16 }
 0x64b   :  { %v749_v21 = vrot.slane %v748_v20, 4 }
 0x64d   :  { %v750_v22 = vadd.f32 %v749_v21, %v748_v20 }
 0x64f   :  { %v751_v23 = vrot.slane %v750_v22, 2 }
 0x651   :  { %v752_v25 = vadd.f32 %v751_v23, %v750_v22 }
 0x653   :  { %v753_v26 = vrot.slane %v752_v25, 1 }
 0x655   :  { %v754_v10 = vadd.f32 %v753_v26, %v752_v25 }
 0x657   :  { %1314 = vrcp.f32 %v754_v10 }
 0x65d   :  { %v1315_v29 = vpop.eup %1314 }
 0x65e   :  { %v759_v30 = vmul.f32 %v1315_v29, %v1313_v13  ;;  %v758_v32 = vmul.f32 %v1315_v29, %v1311_v11  ;;  %v757_v33 = vmul.f32 %v1315_v29, %v1309_v49  ;;  %v756_v34 = vmul.f32 %v1315_v29, %v1307_v9  ;;  %v791_v29 = vld [vmem:[%s1698_s1 + $0x50] sm:$0xff] }
 0x660   :  { %775 = vmatpush.msrb.mxu2 %v759_v30 }
 0x662   :  { %776 = vmatpush.msrb.mxu2 %v758_v32 }
 0x664   :  { %777 = vmatpush.msrb.mxu2 %v757_v33 }
 0x666   :  { %778 = vmatpush.msrb.mxu2 %v756_v34 }
 0x667   :  { %1240 = vmatmul.msk.f32.vlgmr.msrb.gmra.mxu2 %vm120_vm11, %v760_v37 }
 0x6ea   :  { %v780_v41 = vpop.f32.mrf.mxu2 }
 0x6eb   :  { %v784_v44 = vrot.slane %v780_v41, 4 }
 0x6ed   :  { %v786_v51 = vsel %vm263_vm3, %v1586_v27, %v784_v44 }
 0x6ee   :  { %v787_v52 = vadd.f32 %v786_v51, %v524_v45 }
 0x6f0   :  { %v788_v53 = vmax.f32 %v787_v52, 0.0 }
 0x6f2   :  { %820 = vmatpush.msra.mxu2 %v788_v53 }
 0x6f3   :  { %1241 = vmatmul.msk.f32.vlgmr.msra.gmra.mxu2 %vm176_vm0, %v789_v54 }
 0x6fb   :  { %1242 = vmatmul.msk.f32.gmra.mxu2 %vm176_vm0, %v790_v19 }
 0x703   :  { %1243 = vmatmul.msk.f32.gmra.mxu2 %vm176_vm0, %v791_v29 }
 0x776   :  { %v822_v56 = vpop.f32.mrf.mxu2 }
 0x777   :  { %v984_v59 = vrot.slane %v822_v56, 4  ;;  %1245 = vmatpush.msk.msrb.mxu0 %vm263_vm3, %v822_v56 }
 0x779   :  { %1251 = vmatpush.msk.msra.mxu1 %vm263_vm3, %v984_v59 }
 0x77e   :  { %v825_v27 = vpop.f32.mrf.mxu2 }
 0x77f   :  { %834 = vxpose.xlu0.b32.start.end [1/1] (short) (narrow) %v825_v27, 32 }
 0x7e6   :  { %1275 = vset.pattern.permute.xlu0 %v1370_v55 }
 0x805   :  { %112 = vperm.xlu0 %1275, %v27_v60  }
 0x823   :  { %v850_v61 = vpop.trf.xlu0 }
 0x824   :  { %1246 = vmatmul.msk.f32.vlgmr.msrb.gmra.mxu0 %vm250_vm6, %v850_v61  ;;  %976 = vrot.lane.b32.xlu2 %v850_v61, %s1368_s11 }
 0x82b   :  { %v851_v62 = vpop.trf.xlu0 }
 0x82c   :  { %1247 = vmatmul.msk.f32.gmra.mxu0 %vm250_vm6, %v851_v62  ;;  %978 = vrot.lane.b32.xlu2 %v851_v62, %s1368_s11 }
 0x833   :  { %v852_v63 = vpop.trf.xlu0 }
 0x834   :  { %1248 = vmatmul.msk.f32.gmra.mxu0 %vm250_vm6, %v852_v63  ;;  %980 = vrot.lane.b32.xlu2 %v852_v63, %s1368_s11 }
 0x83b   :  { %v853_v1 = vpop.trf.xlu0 }
 0x83c   :  { %117 = vperm.xlu2 %1274, %v28_v0   ;;  %1249 = vmatmul.msk.f32.gmra.mxu0 %vm250_vm6, %v853_v1 }
 0x83d   :  { %982 = vrot.lane.b32.xlu1 %v853_v1, %s1368_s11 }
 0x87e   :  { %v977_v2 = vpop.permute.xlu2 %976 }
 0x87f   :  { %1252 = vmatmul.msk.f32.vlgmr.msra.gmra.mxu1 %vm250_vm6, %v977_v2 }
 0x886   :  { %v979_v3 = vpop.permute.xlu2 %978 }
 0x887   :  { %1253 = vmatmul.msk.f32.gmra.mxu1 %vm250_vm6, %v979_v3 }
 0x88e   :  { %v981_v4 = vpop.permute.xlu2 %980 }
 0x88f   :  { %1254 = vmatmul.msk.f32.gmra.mxu1 %vm250_vm6, %v981_v4 }
 0x8a1   :  { %v898_v5 = vpop.f32.mrf.mxu0 }
 0x8a2   :  { %v899_v58 = vadd.f32 %v898_v5, %v1478_v47 }
 0x8a4   :  { %v910_v15 = vsel %vm120_vm11, %v899_v58, -inf }
 0x8a9   :  { %v901_v7 = vpop.f32.mrf.mxu0 }
 0x8aa   :  { %v902_v49 = vadd.f32 %v901_v7, %v1474_v46 }
 0x8ac   :  { %v911_v13 = vsel %vm120_vm11, %v902_v49, -inf }
 0x8ad   :  { %v914_v18 = vmax.f32 %v910_v15, %v911_v13 }
 0x8af   :  { %v983_v8 = vpop.permute.xlu1 %982 }
 0x8b0   :  { %1255 = vmatmul.msk.f32.gmra.mxu1 %vm250_vm6, %v983_v8 }
 0x8b1   :  { %v904_v9 = vpop.f32.mrf.mxu0 }
 0x8b2   :  { %v905_v11 = vadd.f32 %v904_v9, %v1480_v48 }
 0x8b4   :  { %v912_v16 = vsel %vm120_vm11, %v905_v11, -inf }
 0x8b9   :  { %v907_v12 = vpop.f32.mrf.mxu0 }
 0x8ba   :  { %v908_v14 = vadd.f32 %v907_v12, %v1483_v50 }
 0x8bc   :  { %v913_v17 = vsel %vm120_vm11, %v908_v14, -inf }
 0x8bd   :  { %v915_v20 = vmax.f32 %v912_v16, %v913_v17 }
 0x8bf   :  { %v916_v21 = vmax.f32 %v914_v18, %v915_v20 }
 0x8c1   :  { %v917_v22 = vrot.slane %v916_v21, 4 }
 0x8c3   :  { %v918_v23 = vmax.f32 %v916_v21, %v917_v22 }
 0x8c5   :  { %v919_v25 = vrot.slane %v918_v23, 2 }
 0x8c7   :  { %v920_v26 = vmax.f32 %v918_v23, %v919_v25 }
 0x8c9   :  { %v921_v10 = vrot.slane %v920_v26, 1 }
 0x8cb   :  { %v922_v30 = vmax.f32 %v920_v26, %v921_v10 }
 0x8cd   :  { %v923_v32 = vsub.f32 %v899_v58, %v922_v30  ;;  %v924_v33 = vsub.f32 %v902_v49, %v922_v30  ;;  %v925_v34 = vsub.f32 %v905_v11, %v922_v30  ;;  %v926_v37 = vsub.f32 %v908_v14, %v922_v30 }
 0x8cf   :  { %v927_v41 = vmul.f32 1.442695, %v923_v32  ;;  %v929_v44 = vmul.f32 1.442695, %v924_v33  ;;  %v931_v45 = vmul.f32 1.442695, %v925_v34 }
 0x8d0   :  { %v933_v51 = vmul.f32 1.442695, %v926_v37 }
 0x8d1   :  { %1316 = vpow2.f32 %v927_v41 }
 0x8d2   :  { %1318 = vpow2.f32 %v929_v44 }
 0x8d3   :  { %1320 = vpow2.f32 %v931_v45 }
 0x8d4   :  { %1322 = vpow2.f32 %v933_v51  ;;  %v792_v51 = vld [vmem:[%s1698_s1 + $0x58] sm:$0xff] }
 0x8d5   :  { %1244 = vmatmul.msk.f32.gmra.mxu2 %vm176_vm0, %v792_v51  ;;  %vm1139_vm0 = vcmask 130048  }
 0x8d7   :  { %v1317_v52 = vpop.eup %1316 }
 0x8d8   :  { %v1319_v53 = vpop.eup %1318  ;;  %v935_v54 = vsel %vm120_vm11, %v1317_v52, 0.0 }
 0x8d9   :  { %v1321_v19 = vpop.eup %1320  ;;  %v936_v55 = vsel %vm120_vm11, %v1319_v53, 0.0 }
 0x8da   :  { %v1323_v56 = vpop.eup %1322  ;;  %v937_v59 = vadd.f32 %v936_v55, %v935_v54  ;;  %v938_v27 = vsel %vm120_vm11, %v1321_v19, 0.0 }
 0x8db   :  { %v940_v61 = vsel %vm120_vm11, %v1323_v56, 0.0 }
 0x8dc   :  { %v939_v60 = vadd.f32 %v938_v27, %v937_v59  ;;  %v828_v27 = vpop.f32.mrf.mxu2 }
 0x8de   :  { %v941_v62 = vadd.f32 %v940_v61, %v939_v60 }
 0x8e0   :  { %v942_v63 = vrot.slane %v941_v62, 4 }
 0x8e2   :  { %v943_v0 = vadd.f32 %v942_v63, %v941_v62 }
 0x8e4   :  { %v944_v1 = vrot.slane %v943_v0, 2 }
 0x8e6   :  { %v945_v2 = vadd.f32 %v944_v1, %v943_v0 }
 0x8e8   :  { %v946_v3 = vrot.slane %v945_v2, 1 }
 0x8ea   :  { %v947_v4 = vadd.f32 %v946_v3, %v945_v2 }
 0x8ec   :  { %1324 = vrcp.f32 %v947_v4 }
 0x8f2   :  { %v1325_v5 = vpop.eup %1324 }
 0x8f3   :  { %v952_v7 = vmul.f32 %v1325_v5, %v1323_v56  ;;  %v951_v8 = vmul.f32 %v1325_v5, %v1321_v19  ;;  %v950_v9 = vmul.f32 %v1325_v5, %v1319_v53  ;;  %v949_v49 = vmul.f32 %v1325_v5, %v1317_v52 }
 0x8f5   :  { %968 = vmatpush.msrb.mxu2 %v952_v7 }
 0x8f7   :  { %969 = vmatpush.msrb.mxu2 %v951_v8 }
 0x8f9   :  { %970 = vmatpush.msrb.mxu2 %v950_v9 }
 0x8fb   :  { %971 = vmatpush.msrb.mxu2 %v949_v49 }
 0x8fc   :  { %v1012_v58 = vpop.f32.mrf.mxu1  ;;  %1250 = vmatmul.msk.f32.vlgmr.msrb.gmra.mxu2 %vm120_vm11, %v828_v27 }
 0x8fd   :  { %v1013_v14 = vadd.f32 %v1012_v58, %v1478_v47  ;;  %v1067_v58 = vrot.slane %v828_v27, 4 }
 0x8ff   :  { %v1024_v20 = vsel %vm120_vm11, %v1013_v14, -inf }
 0x904   :  { %v1015_v11 = vpop.f32.mrf.mxu1 }
 0x905   :  { %v1016_v13 = vadd.f32 %v1015_v11, %v1474_v46 }
 0x907   :  { %v1025_v17 = vsel %vm120_vm11, %v1016_v13, -inf }
 0x908   :  { %v1028_v23 = vmax.f32 %v1024_v20, %v1025_v17 }
 0x90c   :  { %v1018_v12 = vpop.f32.mrf.mxu1 }
 0x90d   :  { %v1019_v15 = vadd.f32 %v1018_v12, %v1480_v48  ;;  %v118_v12 = vpop.permute.xlu2 %117 }
 0x90f   :  { %v1026_v21 = vsel %vm120_vm11, %v1019_v15, -inf }
 0x92d   :  { %v1021_v16 = vpop.f32.mrf.mxu1 }
 0x92e   :  { %v1022_v18 = vadd.f32 %v1021_v16, %v1483_v50 }
 0x930   :  { %v1027_v22 = vsel %vm120_vm11, %v1022_v18, -inf }
 0x931   :  { %v1029_v25 = vmax.f32 %v1026_v21, %v1027_v22 }
 0x933   :  { %v1030_v26 = vmax.f32 %v1028_v23, %v1029_v25 }
 0x935   :  { %v1031_v10 = vrot.slane %v1030_v26, 4 }
 0x937   :  { %v1032_v46 = vmax.f32 %v1030_v26, %v1031_v10  ;;  %v1340_v26 = vld [vmem:[%s1698_s1 + $0x98] sm:$0x1] }
 0x939   :  { %v1033_v29 = vrot.slane %v1032_v46, 2 }
 0x93b   :  { %v1034_v47 = vmax.f32 %v1032_v46, %v1033_v29  ;;  %v59_v29 = vmax.f32 %v1448_v24, 0.0 }
 0x93d   :  { %v1035_v30 = vrot.slane %v1034_v47, 1 }
 0x93f   :  { %v1036_v48 = vmax.f32 %v1034_v47, %v1035_v30 }
 0x941   :  { %v1037_v32 = vsub.f32 %v1013_v14, %v1036_v48  ;;  %v1038_v33 = vsub.f32 %v1016_v13, %v1036_v48  ;;  %v1039_v34 = vsub.f32 %v1019_v15, %v1036_v48  ;;  %v1040_v37 = vsub.f32 %v1022_v18, %v1036_v48  ;;  %v113_v13 = vpop.permute.xlu0 %112 }
 0x942   :  { %v1371_v14 = vmov 1.0   ;;  %v148_v15 = vadd.f32 %v1516_v6, %v118_v12  ;;  %v145_v39 = vadd.f32 %v1514_v57, %v113_v13  ;;  %v25_v57 = vld [vmem:[%s1698_s1 + $0x90] sm:$0xff]  ;;  %s1372_s1 = smov [#allocation2]  }
 0x943   :  { %v1041_v50 = vmul.f32 1.442695, %v1037_v32  ;;  %v1043_v41 = vmul.f32 1.442695, %v1038_v33  ;;  %v1045_v44 = vmul.f32 1.442695, %v1039_v34 }
 0x944   :  { %v1047_v45 = vmul.f32 1.442695, %v1040_v37  ;;  %v151_v43 = vmax.f32 %v148_v15, 0.0  ;;  %v150_v36 = vmax.f32 %v145_v39, 0.0  ;;  %s1189_s13 = sshll.u32 %s1372_s1, 4  ;;  %s1190_s13 = int_to_ptr.vmem [resolvable:$true] %s1189_s13 }
 0x945   :  { %1326 = vpow2.f32 %v1041_v50 }
 0x946   :  { %1328 = vpow2.f32 %v1043_v41 }
 0x947   :  { %1330 = vpow2.f32 %v1045_v44 }
 0x948   :  { %1332 = vpow2.f32 %v1047_v45 }
 0x94b   :  { %v1327_v52 = vpop.eup %1326 }
 0x94c   :  { %v1329_v53 = vpop.eup %1328  ;;  %v1049_v54 = vsel %vm120_vm11, %v1327_v52, 0.0 }
 0x94d   :  { %v1331_v19 = vpop.eup %1330  ;;  %v1050_v55 = vsel %vm120_vm11, %v1329_v53, 0.0 }
 0x94e   :  { %v1333_v56 = vpop.eup %1332  ;;  %v1051_v59 = vadd.f32 %v1050_v55, %v1049_v54  ;;  %v1052_v60 = vsel %vm120_vm11, %v1331_v19, 0.0 }
 0x94f   :  { %v1054_v62 = vsel %vm120_vm11, %v1333_v56, 0.0 }
 0x950   :  { %v1053_v61 = vadd.f32 %v1052_v60, %v1051_v59 }
 0x952   :  { %v1055_v63 = vadd.f32 %v1054_v62, %v1053_v61 }
 0x954   :  { %v1056_v0 = vrot.slane %v1055_v63, 4 }
 0x956   :  { %v1057_v1 = vadd.f32 %v1056_v0, %v1055_v63 }
 0x958   :  { %v1058_v2 = vrot.slane %v1057_v1, 2  ;;  %v831_v42 = vpop.f32.mrf.mxu2 }
 0x95a   :  { %v1059_v3 = vadd.f32 %v1058_v2, %v1057_v1 }
 0x95c   :  { %v1060_v4 = vrot.slane %v1059_v3, 1 }
 0x95e   :  { %v1061_v5 = vadd.f32 %v1060_v4, %v1059_v3 }
 0x960   :  { %1334 = vrcp.f32 %v1061_v5 }
 0x966   :  { %v1335_v7 = vpop.eup %1334 }
 0x967   :  { %v1066_v8 = vmul.f32 %v1335_v7, %v1333_v56  ;;  %v1065_v9 = vmul.f32 %v1335_v7, %v1331_v19  ;;  %v1064_v49 = vmul.f32 %v1335_v7, %v1329_v53  ;;  %v1063_v11 = vmul.f32 %v1335_v7, %v1327_v52 }
 0x969   :  { %1082 = vmatpush.msra.mxu3 %v1066_v8 }
 0x96b   :  { %1083 = vmatpush.msra.mxu3 %v1065_v9 }
 0x96d   :  { %1084 = vmatpush.msra.mxu3 %v1064_v49 }
 0x96f   :  { %1085 = vmatpush.msra.mxu3 %v1063_v11 }
 0x970   :  { %1256 = vmatmul.msk.f32.vlgmr.msra.gmra.mxu3 %vm120_vm11, %v1067_v58 }
 0x971   :  { %1261 = vmatpush.msk.msrb.mxu3 %vm1107_vm12, %v1371_v14 }
 0x973   :  { %1262 = vmatpush.msk.msrb.mxu3 %vm1106_vm13, %v1371_v14 }
 0x975   :  { %1263 = vmatpush.msk.msrb.mxu3 %vm1105_vm14, %v1371_v14 }
 0x977   :  { %1264 = vmatpush.msk.msrb.mxu3 %vm1104_vm15, %v1371_v14 }
 0x979   :  { %1156 = vmatpush.msra.mxu3 %v151_v43 }
 0x97b   :  { %1157 = vmatpush.msra.mxu3 %v150_v36 }
 0x97f   :  { %v973_v17 = vpop.f32.mrf.mxu2 }
 0x9f3   :  { %v1087_v16 = vpop.f32.mrf.mxu3 }
 0x9f4   :  { %v1091_v6 = vrot.slane %v1087_v16, 4 }
 0x9f6   :  { %v1093_v31 = vsel %vm263_vm3, %v973_v17, %v1091_v6 }
 0x9f7   :  { %v1094_v38 = vadd.f32 %v1093_v31, %v831_v42 }
 0x9f9   :  { %v1095_v18 = vmax.f32 %v1094_v38, 0.0 }
 0x9fb   :  { %v1096_v28 = vmul.f32 %v1095_v18, %v25_v57 }
 0x9fd   :  { %v1097_v35 = vsel %vm120_vm11, %v1096_v28, 0.0 }
 0x9fe   :  { %v1098_v40 = vrot.slane %v1097_v35, 4 }
 0xa00   :  { %v1099_v20 = vadd.f32 %v1098_v40, %v1097_v35 }
 0xa02   :  { %v1100_v21 = vrot.slane %v1099_v20, 2 }
 0xa04   :  { %v1101_v22 = vadd.f32 %v1100_v21, %v1099_v20 }
 0xa06   :  { %v1102_v23 = vrot.slane %v1101_v22, 1 }
 0xa08   :  { %v1103_v25 = vadd.f32 %v1102_v23, %v1101_v22 }
 0xa0a   :  { %1265 = vmatmul.msk.f32.vlgmr.msrb.gmra.mxu3 %vm120_vm11, %v1103_v25 }
 0xa12   :  { %1266 = vmatmul.msk.f32.vlgmr.msra.gmra.mxu3 %vm1139_vm0, %v1340_v26 }
 0xa8d   :  { %v1136_v10 = vpop.f32.mrf.mxu3 }
 0xa95   :  { %v1159_v46 = vpop.f32.mrf.mxu3 }
 0xa96   :  { %v1160_v47 = vadd.f32 %v1159_v46, %v1136_v10 }
 0xa98   :  { %v1162_v30 = vadd.f32 %v1160_v47, %v59_v29 }
 0xa9a   :  { %v1163_v48 = vsub.f32 0.0, %v1162_v30 }
 0xa9c   :  { %v1164_v32 = vmul.f32 1.442695, %v1163_v48 }
 0xa9e   :  { %1336 = vpow2.f32 %v1164_v32 }
 0xaa4   :  { %v1337_v33 = vpop.eup %1336 }
 0xaa5   :  { %v1166_v34 = vadd.f32 1.0, %v1337_v33 }
 0xaa7   :  { %1338 = vrcp.f32 %v1166_v34  ;;  %v1178_v44 = vand.u32 2147483648, %v1166_v34  ;;  %v1176_v51 = vand.u32 2147483647, %v1166_v34  ;;  %vm1172_vm2 = vweird.f32 %v1166_v34 }
 0xaa9   :  { %v1179_v52 = vor.u32 1.1754944e-38, %v1178_v44  ;;  %vm1177_vm5 = vcmp.eq.f32.partialorder %v1176_v51, 8.507059e+37 }
 0xaad   :  { %v1339_v37 = vpop.eup %1338 }
 0xaae   :  { %v1168_v50 = vmul.f32 %v1339_v37, %v1166_v34  ;;  %vm1173_vm1 = vweird.f32 %v1339_v37 }
 0xaaf   :  { %vm1174_vm3 = vmor %vm1172_vm2, %vm1173_vm1 }
 0xab0   :  { %v1169_v41 = vsub.f32 1.0, %v1168_v50 }
 0xab2   :  { %v1170_v45 = vmul.f32 %v1339_v37, %v1169_v41 }
 0xab4   :  { %v1171_v24 = vadd.f32 %v1339_v37, %v1170_v45 }
 0xab6   :  { %v1175_v53 = vsel %vm1174_vm3, %v1339_v37, %v1171_v24 }
 0xab7   :  { %v1180_v54 = vsel %vm1177_vm5, %v1179_v52, %v1175_v53 }
 0xab8   :  { %1183 = vst.msk [vmem:[#allocation2] sm:$0x1] %vm1182_vm4, %v1180_v54 }
 0xab9   :  { %1194 = dma.vmem_to_hbm [thread:$0]  %s1190_s13, 16, %s1192_s16, [#allocation3]  }
 0xaba   :  { %1365 = dma.done.wait [#allocation3], 16  }
 0xabb   :  { %1366 = vsyncadd [#allocation3], 4294967280 }
 0xabc   :  { %1199 = vsyncpa [#allocation3], 1 }

</bundles_post_ra>
